<compile_context>
chip_gen: v7x
topology: tpu7x:2x2x1
jax: 0.10.0
libtpu: 0.0.40
codegen_flags: <defaults>
</compile_context>

<pallas_src>
import functools

import jax
import jax.numpy as jnp
from jax.experimental import pallas as pl
from jax.experimental.pallas import tpu as pltpu

HIDDEN = 24          # hidden width (multiple of 8 -> sublane aligned)
DEPTH = 6            # number of hidden Linear+ReLU layers
IN_DIM = 2
OUT_DIM = 2
IN_PAD = 8           # input-slab feature rows (f32 min sublane tile)
OUT_PAD = 8          # output-slab feature rows
DEFAULT_TILE_B = 8192
_PRECISION = jax.lax.Precision.HIGHEST


def _round_up(n, m):
    return ((n + m - 1) // m) * m


def _mlp_kernel(depth, x_ref, w0_ref, wh_ref, wo_ref, bh_ref, bo_ref, o_ref):
    # x_ref : (IN_PAD, TILE_B)          rows >= IN_DIM are zero
    # w0_ref: (HIDDEN, IN_PAD)          cols >= IN_DIM are zero
    # wh_ref: (depth-1, HIDDEN, HIDDEN) PyTorch (out, in) layout
    # wo_ref: (OUT_PAD, HIDDEN)         rows >= OUT_DIM are zero
    # bh_ref: (depth, HIDDEN, 1)
    # bo_ref: (OUT_PAD, 1)              rows >= OUT_DIM are zero
    # o_ref : (OUT_PAD, TILE_B)         rows >= OUT_DIM come out exactly zero
    dot = functools.partial(jnp.dot, preferred_element_type=jnp.float32,
                            precision=_PRECISION)
    h = jnp.maximum(dot(w0_ref[...], x_ref[...]) + bh_ref[0], 0.0)
    for i in range(1, depth):
        h = jnp.maximum(dot(wh_ref[i - 1], h) + bh_ref[i], 0.0)
    o_ref[...] = dot(wo_ref[...], h) + bo_ref[...]


def _pick_tile(batch, tile_b):
    """Round tile_b to a multiple of 128, cap it by a conservative VMEM
    estimate, and keep the grid at >= 2 steps when the batch allows (v7x
    megacore)."""
    tile_b = _round_up(max(int(tile_b), 128), 128)

    # VMEM guard: double-buffered 8-row I/O slabs + ~4 live (HIDDEN, tile_b)
    # f32 activations + resident params (<256 KiB), kept under a 12 MiB budget
    # (below the 16 MiB v5e scoped default; ample headroom on v6e/v7x).
    per_lane_bytes = 4 * (2 * IN_PAD + 2 * OUT_PAD + 4 * HIDDEN)
    max_tile = ((12 * 1024 * 1024 - 256 * 1024) // per_lane_bytes) // 128 * 128
    tile_b = min(tile_b, max(max_tile, 128))

    batch_128 = _round_up(batch, 128)
    tile_b = min(tile_b, batch_128)
    if batch_128 > 128 and tile_b >= batch_128:
        # Split into (at least) two tiles so both TensorCores get work on v7x.
        tile_b = _round_up(batch_128 // 2, 128)
    batch_p = _round_up(batch_128, tile_b)
    return tile_b, batch_p


def deep_relu_net(x, params, tile_b=DEFAULT_TILE_B):
    """Forward pass. x: (B, IN_DIM) f32. params: list of (W, b) with W in
    PyTorch (out, in) orientation: [(24,2), (24,24) x5, (2,24)]."""
    x = jnp.asarray(x, jnp.float32)
    batch = x.shape[0]
    n_layers = len(params)            # DEPTH + 1
    depth = n_layers - 1
    assert depth >= 2, "kernel assumes at least two hidden layers"

    # ---- pack parameters into zero-padded, VMEM-resident blobs ----
    w0 = jnp.zeros((HIDDEN, IN_PAD), jnp.float32)
    w0 = w0.at[:, :IN_DIM].set(jnp.asarray(params[0][0], jnp.float32))
    wh = jnp.stack([jnp.asarray(params[i][0], jnp.float32)
                    for i in range(1, depth)])                       # (depth-1, H, H)
    wo = jnp.zeros((OUT_PAD, HIDDEN), jnp.float32)
    wo = wo.at[:OUT_DIM, :].set(jnp.asarray(params[depth][0], jnp.float32))
    bh = jnp.stack([jnp.asarray(params[i][1], jnp.float32)
                    for i in range(depth)])[..., None]               # (depth, H, 1)
    bo = jnp.zeros((OUT_PAD, 1), jnp.float32)
    bo = bo.at[:OUT_DIM, 0].set(jnp.asarray(params[depth][1], jnp.float32))

    tile_b, batch_p = _pick_tile(batch, tile_b)

    # ---- transposed (features, batch) layout, padded to 8 feature rows ----
    # Batch maps onto the 128-wide lane axis -> lane-dense loads/stores.
    x_t = jnp.zeros((IN_PAD, batch_p), jnp.float32)
    x_t = x_t.at[:IN_DIM, :batch].set(x.T)

    grid = (batch_p // tile_b,)
    kernel = functools.partial(_mlp_kernel, depth)

    out_t = pl.pallas_call(
        kernel,
        out_shape=jax.ShapeDtypeStruct((OUT_PAD, batch_p), jnp.float32),
        grid=grid,
        in_specs=[
            pl.BlockSpec((IN_PAD, tile_b), lambda i: (0, i)),
            pl.BlockSpec((HIDDEN, IN_PAD), lambda i: (0, 0)),
            pl.BlockSpec((depth - 1, HIDDEN, HIDDEN), lambda i: (0, 0, 0)),
            pl.BlockSpec((OUT_PAD, HIDDEN), lambda i: (0, 0)),
            pl.BlockSpec((depth, HIDDEN, 1), lambda i: (0, 0, 0)),
            pl.BlockSpec((OUT_PAD, 1), lambda i: (0, 0)),
        ],
        out_specs=pl.BlockSpec((OUT_PAD, tile_b), lambda i: (0, i)),
        compiler_params=pltpu.CompilerParams(
            dimension_semantics=("parallel",)),
    )(x_t, w0, wh, wo, bh, bo)

    # slice away feature / batch padding; return PyTorch layout (B, OUT_DIM)
    return out_t[:OUT_DIM, :batch].T


def init_params(key, hidden=HIDDEN, depth=DEPTH):
    """Deterministic init mimicking PyTorch's default Linear init:
    U(-1/sqrt(fan_in), 1/sqrt(fan_in)) for both weight and bias."""
    params = []
    dims = [(IN_DIM if i == 0 else hidden, hidden) for i in range(depth)]
    dims.append((hidden, OUT_DIM))
    for (fan_in, fan_out) in dims:
        key, kw, kb = jax.random.split(key, 3)
        bound = 1.0 / (fan_in ** 0.5)
        w = jax.random.uniform(kw, (fan_out, fan_in), jnp.float32,
                               minval=-bound, maxval=bound)
        b = jax.random.uniform(kb, (fan_out,), jnp.float32,
                               minval=-bound, maxval=bound)
        params.append((w, b))
    return params


def reference_forward(x, params):
    h = jnp.asarray(x, jnp.float32)
    for w, b in params[:-1]:
        h = jnp.maximum(jnp.dot(h, w.T, precision=_PRECISION) + b, 0.0)
    w, b = params[-1]
    return jnp.dot(h, w.T, precision=_PRECISION) + b


if __name__ == "__main__":
    key = jax.random.PRNGKey(0)
    key, kx = jax.random.split(key)
    params = init_params(key)

    # small batch: pads up to a single 128-wide lane tile (grid = 1)
    batch = 8
    x = jax.random.normal(kx, (batch, IN_DIM), jnp.float32)
    out = jax.block_until_ready(deep_relu_net(x, params))
    ref = reference_forward(x, params)
    assert out.shape == (batch, OUT_DIM)
    assert jnp.allclose(out, ref, atol=1e-5, rtol=1e-5)

    # non-multiple-of-128 batch: exercises batch padding + a 2-step grid
    key, kx2 = jax.random.split(key)
    batch2 = 300
    x2 = jax.random.normal(kx2, (batch2, IN_DIM), jnp.float32)
    out2 = jax.block_until_ready(deep_relu_net(x2, params))
    ref2 = reference_forward(x2, params)
    assert out2.shape == (batch2, OUT_DIM)
    assert jnp.allclose(out2, ref2, atol=1e-5, rtol=1e-5)

    # larger batch: exercises the big-tile path split across 2 grid steps
    key, kx3 = jax.random.split(key)
    batch3 = 4096
    x3 = jax.random.normal(kx3, (batch3, IN_DIM), jnp.float32)
    out3 = jax.block_until_ready(deep_relu_net(x3, params))
    ref3 = reference_forward(x3, params)
    assert out3.shape == (batch3, OUT_DIM)
    assert jnp.allclose(out3, ref3, atol=1e-5, rtol=1e-5)

    print("KERNEL_OK")
</pallas_src>

<mosaic_0001>
module attributes {stable_mosaic.version = 11 : i64} {
  func.func @_mlp_kernel(%arg0: i32, %arg1: memref<8x128xf32, #tpu.memory_space<vmem>>, %arg2: memref<24x8xf32, #tpu.memory_space<vmem>>, %arg3: memref<5x24x24xf32, #tpu.memory_space<vmem>>, %arg4: memref<8x24xf32, #tpu.memory_space<vmem>>, %arg5: memref<6x24x1xf32, #tpu.memory_space<vmem>>, %arg6: memref<8x1xf32, #tpu.memory_space<vmem>>, %arg7: memref<8x128xf32, #tpu.memory_space<vmem>>) attributes {dimension_semantics = [#tpu.dimension_semantics<parallel>], iteration_bounds = array<i64: 1>, scalar_prefetch = 0 : i64, scratch_operands = 0 : i64, tpu.core_type = #tpu.core_type<tc>, window_params = [{transform_indices = @transform_0, window_bounds = array<i64: 8, 128>}, {pipeline_mode = #tpu.pipeline_mode<synchronous>, transform_indices = @transform_1, window_bounds = array<i64: 24, 8>}, {pipeline_mode = #tpu.pipeline_mode<synchronous>, transform_indices = @transform_2, window_bounds = array<i64: 5, 24, 24>}, {pipeline_mode = #tpu.pipeline_mode<synchronous>, transform_indices = @transform_3, window_bounds = array<i64: 8, 24>}, {pipeline_mode = #tpu.pipeline_mode<synchronous>, transform_indices = @transform_4, window_bounds = array<i64: 6, 24, 1>}, {pipeline_mode = #tpu.pipeline_mode<synchronous>, transform_indices = @transform_5, window_bounds = array<i64: 8, 1>}, {transform_indices = @transform_6, window_bounds = array<i64: 8, 128>}]} {
    %c0 = arith.constant 0 : index
    %c0_0 = arith.constant 0 : index
    %0 = vector.load %arg2[%c0, %c0_0] : memref<24x8xf32, #tpu.memory_space<vmem>>, vector<24x8xf32>
    %c0_1 = arith.constant 0 : index
    %c0_2 = arith.constant 0 : index
    %1 = vector.load %arg1[%c0_1, %c0_2] : memref<8x128xf32, #tpu.memory_space<vmem>>, vector<8x128xf32>
    %cst = arith.constant dense<0.000000e+00> : vector<24x128xf32>
    %2 = tpu.matmul %0, %1, %cst {dimension_numbers = #tpu.dot_dimension_numbers<[1], [0], [0], [1], [0, 0, 1, 1], [], []>, precision = #tpu.contract_precision<fp32>} : vector<24x8xf32>, vector<8x128xf32>, vector<24x128xf32> -> vector<24x128xf32>
    %c0_3 = arith.constant 0 : index
    %c0_4 = arith.constant 0 : index
    %c0_5 = arith.constant 0 : index
    %3 = vector.load %arg5[%c0_3, %c0_4, %c0_5] : memref<6x24x1xf32, #tpu.memory_space<vmem>>, vector<1x24x1xf32>
    %4 = vector.shape_cast %3 : vector<1x24x1xf32> to vector<24x1xf32>
    %5 = vector.broadcast %4 : vector<24x1xf32> to vector<24x128xf32>
    %6 = arith.addf %2, %5 : vector<24x128xf32>
    %cst_6 = arith.constant 0.000000e+00 : f32
    %7 = vector.broadcast %cst_6 : f32 to vector<24x128xf32>
    %8 = arith.maximumf %6, %7 : vector<24x128xf32>
    %c0_7 = arith.constant 0 : index
    %c0_8 = arith.constant 0 : index
    %c0_9 = arith.constant 0 : index
    %9 = vector.load %arg3[%c0_7, %c0_8, %c0_9] : memref<5x24x24xf32, #tpu.memory_space<vmem>>, vector<1x24x24xf32>
    %10 = vector.shape_cast %9 : vector<1x24x24xf32> to vector<24x24xf32>
    %cst_10 = arith.constant dense<0.000000e+00> : vector<24x128xf32>
    %11 = tpu.matmul %10, %8, %cst_10 {dimension_numbers = #tpu.dot_dimension_numbers<[1], [0], [0], [1], [0, 0, 1, 1], [], []>, precision = #tpu.contract_precision<fp32>} : vector<24x24xf32>, vector<24x128xf32>, vector<24x128xf32> -> vector<24x128xf32>
    %c1 = arith.constant 1 : index
    %c0_11 = arith.constant 0 : index
    %c0_12 = arith.constant 0 : index
    %12 = vector.load %arg5[%c1, %c0_11, %c0_12] : memref<6x24x1xf32, #tpu.memory_space<vmem>>, vector<1x24x1xf32>
    %13 = vector.shape_cast %12 : vector<1x24x1xf32> to vector<24x1xf32>
    %14 = vector.broadcast %13 : vector<24x1xf32> to vector<24x128xf32>
    %15 = arith.addf %11, %14 : vector<24x128xf32>
    %cst_13 = arith.constant 0.000000e+00 : f32
    %16 = vector.broadcast %cst_13 : f32 to vector<24x128xf32>
    %17 = arith.maximumf %15, %16 : vector<24x128xf32>
    %c1_14 = arith.constant 1 : index
    %c0_15 = arith.constant 0 : index
    %c0_16 = arith.constant 0 : index
    %18 = vector.load %arg3[%c1_14, %c0_15, %c0_16] : memref<5x24x24xf32, #tpu.memory_space<vmem>>, vector<1x24x24xf32>
    %19 = vector.shape_cast %18 : vector<1x24x24xf32> to vector<24x24xf32>
    %cst_17 = arith.constant dense<0.000000e+00> : vector<24x128xf32>
    %20 = tpu.matmul %19, %17, %cst_17 {dimension_numbers = #tpu.dot_dimension_numbers<[1], [0], [0], [1], [0, 0, 1, 1], [], []>, precision = #tpu.contract_precision<fp32>} : vector<24x24xf32>, vector<24x128xf32>, vector<24x128xf32> -> vector<24x128xf32>
    %c2 = arith.constant 2 : index
    %c0_18 = arith.constant 0 : index
    %c0_19 = arith.constant 0 : index
    %21 = vector.load %arg5[%c2, %c0_18, %c0_19] : memref<6x24x1xf32, #tpu.memory_space<vmem>>, vector<1x24x1xf32>
    %22 = vector.shape_cast %21 : vector<1x24x1xf32> to vector<24x1xf32>
    %23 = vector.broadcast %22 : vector<24x1xf32> to vector<24x128xf32>
    %24 = arith.addf %20, %23 : vector<24x128xf32>
    %cst_20 = arith.constant 0.000000e+00 : f32
    %25 = vector.broadcast %cst_20 : f32 to vector<24x128xf32>
    %26 = arith.maximumf %24, %25 : vector<24x128xf32>
    %c2_21 = arith.constant 2 : index
    %c0_22 = arith.constant 0 : index
    %c0_23 = arith.constant 0 : index
    %27 = vector.load %arg3[%c2_21, %c0_22, %c0_23] : memref<5x24x24xf32, #tpu.memory_space<vmem>>, vector<1x24x24xf32>
    %28 = vector.shape_cast %27 : vector<1x24x24xf32> to vector<24x24xf32>
    %cst_24 = arith.constant dense<0.000000e+00> : vector<24x128xf32>
    %29 = tpu.matmul %28, %26, %cst_24 {dimension_numbers = #tpu.dot_dimension_numbers<[1], [0], [0], [1], [0, 0, 1, 1], [], []>, precision = #tpu.contract_precision<fp32>} : vector<24x24xf32>, vector<24x128xf32>, vector<24x128xf32> -> vector<24x128xf32>
    %c3 = arith.constant 3 : index
    %c0_25 = arith.constant 0 : index
    %c0_26 = arith.constant 0 : index
    %30 = vector.load %arg5[%c3, %c0_25, %c0_26] : memref<6x24x1xf32, #tpu.memory_space<vmem>>, vector<1x24x1xf32>
    %31 = vector.shape_cast %30 : vector<1x24x1xf32> to vector<24x1xf32>
    %32 = vector.broadcast %31 : vector<24x1xf32> to vector<24x128xf32>
    %33 = arith.addf %29, %32 : vector<24x128xf32>
    %cst_27 = arith.constant 0.000000e+00 : f32
    %34 = vector.broadcast %cst_27 : f32 to vector<24x128xf32>
    %35 = arith.maximumf %33, %34 : vector<24x128xf32>
    %c3_28 = arith.constant 3 : index
    %c0_29 = arith.constant 0 : index
    %c0_30 = arith.constant 0 : index
    %36 = vector.load %arg3[%c3_28, %c0_29, %c0_30] : memref<5x24x24xf32, #tpu.memory_space<vmem>>, vector<1x24x24xf32>
    %37 = vector.shape_cast %36 : vector<1x24x24xf32> to vector<24x24xf32>
    %cst_31 = arith.constant dense<0.000000e+00> : vector<24x128xf32>
    %38 = tpu.matmul %37, %35, %cst_31 {dimension_numbers = #tpu.dot_dimension_numbers<[1], [0], [0], [1], [0, 0, 1, 1], [], []>, precision = #tpu.contract_precision<fp32>} : vector<24x24xf32>, vector<24x128xf32>, vector<24x128xf32> -> vector<24x128xf32>
    %c4 = arith.constant 4 : index
    %c0_32 = arith.constant 0 : index
    %c0_33 = arith.constant 0 : index
    %39 = vector.load %arg5[%c4, %c0_32, %c0_33] : memref<6x24x1xf32, #tpu.memory_space<vmem>>, vector<1x24x1xf32>
    %40 = vector.shape_cast %39 : vector<1x24x1xf32> to vector<24x1xf32>
    %41 = vector.broadcast %40 : vector<24x1xf32> to vector<24x128xf32>
    %42 = arith.addf %38, %41 : vector<24x128xf32>
    %cst_34 = arith.constant 0.000000e+00 : f32
    %43 = vector.broadcast %cst_34 : f32 to vector<24x128xf32>
    %44 = arith.maximumf %42, %43 : vector<24x128xf32>
    %c4_35 = arith.constant 4 : index
    %c0_36 = arith.constant 0 : index
    %c0_37 = arith.constant 0 : index
    %45 = vector.load %arg3[%c4_35, %c0_36, %c0_37] : memref<5x24x24xf32, #tpu.memory_space<vmem>>, vector<1x24x24xf32>
    %46 = vector.shape_cast %45 : vector<1x24x24xf32> to vector<24x24xf32>
    %cst_38 = arith.constant dense<0.000000e+00> : vector<24x128xf32>
    %47 = tpu.matmul %46, %44, %cst_38 {dimension_numbers = #tpu.dot_dimension_numbers<[1], [0], [0], [1], [0, 0, 1, 1], [], []>, precision = #tpu.contract_precision<fp32>} : vector<24x24xf32>, vector<24x128xf32>, vector<24x128xf32> -> vector<24x128xf32>
    %c5 = arith.constant 5 : index
    %c0_39 = arith.constant 0 : index
    %c0_40 = arith.constant 0 : index
    %48 = vector.load %arg5[%c5, %c0_39, %c0_40] : memref<6x24x1xf32, #tpu.memory_space<vmem>>, vector<1x24x1xf32>
    %49 = vector.shape_cast %48 : vector<1x24x1xf32> to vector<24x1xf32>
    %50 = vector.broadcast %49 : vector<24x1xf32> to vector<24x128xf32>
    %51 = arith.addf %47, %50 : vector<24x128xf32>
    %cst_41 = arith.constant 0.000000e+00 : f32
    %52 = vector.broadcast %cst_41 : f32 to vector<24x128xf32>
    %53 = arith.maximumf %51, %52 : vector<24x128xf32>
    %c0_42 = arith.constant 0 : index
    %c0_43 = arith.constant 0 : index
    %54 = vector.load %arg4[%c0_42, %c0_43] : memref<8x24xf32, #tpu.memory_space<vmem>>, vector<8x24xf32>
    %cst_44 = arith.constant dense<0.000000e+00> : vector<8x128xf32>
    %55 = tpu.matmul %54, %53, %cst_44 {dimension_numbers = #tpu.dot_dimension_numbers<[1], [0], [0], [1], [0, 0, 1, 1], [], []>, precision = #tpu.contract_precision<fp32>} : vector<8x24xf32>, vector<24x128xf32>, vector<8x128xf32> -> vector<8x128xf32>
    %c0_45 = arith.constant 0 : index
    %c0_46 = arith.constant 0 : index
    %56 = vector.load %arg6[%c0_45, %c0_46] : memref<8x1xf32, #tpu.memory_space<vmem>>, vector<8x1xf32>
    %57 = vector.broadcast %56 : vector<8x1xf32> to vector<8x128xf32>
    %58 = arith.addf %55, %57 : vector<8x128xf32>
    %c0_47 = arith.constant 0 : index
    %c0_48 = arith.constant 0 : index
    %59 = vector.load %arg7[%c0_47, %c0_48] : memref<8x128xf32, #tpu.memory_space<vmem>>, vector<8x128xf32>
    tpu.vector_store %arg7[%c0_47, %c0_48], %58 {strides = array<i32>} : memref<8x128xf32, #tpu.memory_space<vmem>>, vector<8x128xf32>,
    return
  }
  func.func @transform_0(%arg0: i32) -> (i32, i32) {
    %c0_i32 = arith.constant 0 : i32
    %c0_i32_0 = arith.constant 0 : i32
    return %c0_i32, %arg0 : i32, i32
  }
  func.func @transform_1(%arg0: i32) -> (i32, i32) {
    %c0_i32 = arith.constant 0 : i32
    %c0_i32_0 = arith.constant 0 : i32
    %c0_i32_1 = arith.constant 0 : i32
    return %c0_i32, %c0_i32_0 : i32, i32
  }
  func.func @transform_2(%arg0: i32) -> (i32, i32, i32) {
    %c0_i32 = arith.constant 0 : i32
    %c0_i32_0 = arith.constant 0 : i32
    %c0_i32_1 = arith.constant 0 : i32
    %c0_i32_2 = arith.constant 0 : i32
    return %c0_i32, %c0_i32_0, %c0_i32_1 : i32, i32, i32
  }
  func.func @transform_3(%arg0: i32) -> (i32, i32) {
    %c0_i32 = arith.constant 0 : i32
    %c0_i32_0 = arith.constant 0 : i32
    %c0_i32_1 = arith.constant 0 : i32
    return %c0_i32, %c0_i32_0 : i32, i32
  }
  func.func @transform_4(%arg0: i32) -> (i32, i32, i32) {
    %c0_i32 = arith.constant 0 : i32
    %c0_i32_0 = arith.constant 0 : i32
    %c0_i32_1 = arith.constant 0 : i32
    %c0_i32_2 = arith.constant 0 : i32
    return %c0_i32, %c0_i32_0, %c0_i32_1 : i32, i32, i32
  }
  func.func @transform_5(%arg0: i32) -> (i32, i32) {
    %c0_i32 = arith.constant 0 : i32
    %c0_i32_0 = arith.constant 0 : i32
    %c0_i32_1 = arith.constant 0 : i32
    return %c0_i32, %c0_i32_0 : i32, i32
  }
  func.func @transform_6(%arg0: i32) -> (i32, i32) {
    %c0_i32 = arith.constant 0 : i32
    %c0_i32_0 = arith.constant 0 : i32
    return %c0_i32, %arg0 : i32, i32
  }
}

</mosaic_0001>

<bundles_post_ra>
// kernel: tpu_custom_call.1
= control target key start
LH: loop header
LB: loop body
LE: loop exit
PB: predicated region body
PF: predicated region fallthrough
CT: control target
= control target key end

     0   :  { %vm46_vm0 = vcmask 64512   ;;  %v5222_v3 = vmov 0.0   ;;  %vm5223_vm1 = vmmov 0   ;;  %v5224_v11 = vmov 0   ;;  %s6018_s0 = inlined_call_operand.vmem [shape: f32[8,128], index: 0, kind: input, shape index: {}]   ;;  %s6019_s1 = inlined_call_operand.vmem [shape: f32[24,8], index: 1, kind: input, shape index: {}]   ;;  %s6020_s2 = inlined_call_operand.vmem [shape: f32[5,24,24], index: 2, kind: input, shape index: {}]   ;;  %s6021_s3 = inlined_call_operand.vmem [shape: f32[8,24], index: 3, kind: input, shape index: {}]   ;;  %s6022_s4 = inlined_call_operand.vmem [shape: f32[6,24,1], index: 4, kind: input, shape index: {}]   ;;  %s6023_s5 = inlined_call_operand.vmem [shape: f32[8,1], index: 5, kind: input, shape index: {}]   ;;  %s6024_s6 = inlined_call_operand.hbm [shape: f32[8,128], index: 6, kind: output, shape index: {}]  }
   0x1   :  { %v27_v0 = vld [vmem:[%s6018_s0] sm:$0xff]  ;;  %v25_v2 = vld [vmem:[%s6019_s1 + $0x8] sm:$0xff]  ;;  %4319 = vmatprep.subr.mxu0 %v5222_v3  ;;  %4321 = vmatprep.mubr.msk.f32.mxu0 %vm5223_vm1, %v5222_v3  ;;  %v26_v9 = vld [vmem:[%s6019_s1 + $0x10] sm:$0xff] }
   0x2   :  { %v24_v1 = vld [vmem:[%s6019_s1] sm:$0xff]  ;;  %v5272_v4 = vand.u32 4294901760, %v27_v0  ;;  %v51_v6 = vsel %vm46_vm0, %v25_v2, 0  ;;  %4308 = vmatprep.subr.mxu1 %v5222_v3  ;;  %4310 = vmatprep.mubr.msk.f32.mxu1 %vm5223_vm1, %v5222_v3  ;;  %v30_v12 = vld [vmem:[%s6022_s4 + $0x10] sm:$0xff]  ;;  %v54_v16 = vsel %vm46_vm0, %v26_v9, 0  ;;  %v29_v17 = vld [vmem:[%s6022_s4 + $0x8] sm:$0xff] }
   0x3   :  { %v48_v5 = vsel %vm46_vm0, %v24_v1, 0  ;;  %v28_v7 = vld [vmem:[%s6022_s4] sm:$0xff]  ;;  %5196 = vset.pattern.permute.xlu0 %v5224_v11  ;;  %v5299_v14 = vand.u32 4294901760, %v51_v6  ;;  %5197 = vset.pattern.permute.xlu1 %v5224_v11  ;;  %v4053_v20 = vld [vmem:[%s6022_s4 + $0x18] sm:$0xff]  ;;  %v5316_v22 = vand.u32 4294901760, %v54_v16 }
   0x4   :  { %v5281_v8 = vand.u32 4294901760, %v48_v5  ;;  %v5290_v10 = vsub.f32 %v27_v0, %v5272_v4  ;;  %4309 = vmatpush3.msra.mxu1 %v5272_v4  ;;  %33 = vperm.xlu0 %5196, %v28_v7  }
   0x5   :  { %43 = vperm.xlu1 %5197, %v30_v12   ;;  %v5307_v18 = vsub.f32 %v51_v6, %v5299_v14 }
   0x6   :  { %v5297_v13 = vsub.f32 %v48_v5, %v5281_v8  ;;  %v155_v15 = vand.u32 4294901760, %v5290_v10 }
   0x7   :  { %v134_v23 = vand.u32 4294901760, %v5307_v18 }
   0x8   :  { %v124_v19 = vand.u32 4294901760, %v5297_v13  ;;  %v156_v21 = vsub.f32 %v5290_v10, %v155_v15  ;;  %38 = vperm.xlu0 %5196, %v29_v17  }
   0xa   :  { %v125_v24 = vsub.f32 %v5297_v13, %v124_v19 }
   0xb   :  { %11 = vsyncpa [#allocation3], 0  ;;  %v157_v25 = vand.u32 4294901760, %v156_v21  ;;  %600 = vperm.xlu1 %5197, %v4053_v20   ;;  %v5323_v26 = vsub.f32 %v54_v16, %v5316_v22  ;;  %v135_v28 = vsub.f32 %v5307_v18, %v134_v23  ;;  %v4054_v30 = vld [vmem:[%s6022_s4 + $0x20] sm:$0xff]  ;;  %v4055_v31 = vld [vmem:[%s6022_s4 + $0x28] sm:$0xff]  ;;  %v5225_v48 = vmov 0.0|0.0  }
   0xc   :  { %v126_v27 = vand.u32 4294901760, %v125_v24  ;;  %605 = vperm.xlu0 %5196, %v4054_v30   ;;  %v4059_v34 = vld [vmem:[%s6022_s4 + $0x30] sm:$0xff]  ;;  %v4060_v35 = vld [vmem:[%s6022_s4 + $0x38] sm:$0xff]  ;;  %v4061_v37 = vld [vmem:[%s6022_s4 + $0x40] sm:$0xff]  ;;  %4878 = vmatprep.subr.bf16.mxu1 %v5225_v48  ;;  %vm613_vm2 = vcmask 195584  }
   0xd   :  { %4320 = vmatpush3.msra.mxu0 %v157_v25  ;;  %v144_v29 = vand.u32 4294901760, %v5323_v26  ;;  %v136_v32 = vand.u32 4294901760, %v135_v28  ;;  %v4065_v38 = vld [vmem:[%s6022_s4 + $0x48] sm:$0xff]  ;;  %v4066_v39 = vld [vmem:[%s6022_s4 + $0x50] sm:$0xff]  ;;  %v4067_v40 = vld [vmem:[%s6022_s4 + $0x58] sm:$0xff] }
   0xe   :  { %4322 = vmatmul.mubr.f32.vlgmr.msra.gmra.mrb[0].mxu0 %v5281_v8  ;;  %4330 = vmatprep.subr.mxu0 %v5222_v3  ;;  %v4071_v41 = vld [vmem:[%s6022_s4 + $0x60] sm:$0xff]  ;;  %v4072_v42 = vld [vmem:[%s6022_s4 + $0x68] sm:$0xff]  ;;  %v4073_v43 = vld [vmem:[%s6022_s4 + $0x70] sm:$0xff] }
   0xf   :  { %4324 = vmatprep.mubr.msk.f32.mxu0 %vm5223_vm1, %v5222_v3  ;;  %4331 = vmatpush3.msra.mxu0 %v5290_v10  ;;  %v145_v33 = vsub.f32 %v5323_v26, %v144_v29  ;;  %v4077_v44 = vld [vmem:[%s6022_s4 + $0x78] sm:$0xff]  ;;  %v4078_v45 = vld [vmem:[%s6022_s4 + $0x80] sm:$0xff]  ;;  %v4079_v46 = vld [vmem:[%s6022_s4 + $0x88] sm:$0xff] }
  0x10   :  { %4341 = vmatprep.subr.mxu0 %v5222_v3  ;;  %4311 = vmatmul.mubr.f32.vlgmr.msra.gmra.mrb[0].mxu1 %v126_v27  ;;  %v3557_v47 = vld [vmem:[%s6023_s5] sm:$0xff]  ;;  %v592_v58 = vld [vmem:[%s6020_s2 + $0x8] sm:$0xff]  ;;  %v593_v63 = vld [vmem:[%s6020_s2 + $0x10] sm:$0xff] }
  0x11   :  { %4313 = vmatprep.mubr.msk.f32.mxu1 %vm5223_vm1, %v5222_v3  ;;  %610 = vperm.xlu1 %5197, %v4055_v31   ;;  %v146_v36 = vand.u32 4294901760, %v145_v33  ;;  %v591_v55 = vld [vmem:[%s6020_s2] sm:$0xff]  ;;  %v618_v61 = vsel %vm613_vm2, %v592_v58, 0  ;;  %v4058_v58 = vld [vmem:[%s6020_s2 + $0x28] sm:$0xff] }
  0x12   :  { %4325 = vmatmul.mubr.f32.gmra.mrb[2].mxu0 %v5299_v14  ;;  %1194 = vperm.xlu0 %5196, %v4059_v34   ;;  %v615_v56 = vsel %vm613_vm2, %v591_v55, 0  ;;  %v5454_v5 = vand.u32 4294901760, %v618_v61 }
  0x13   :  { %4327 = vmatprep.mubr.msk.f32.mxu0 %vm5223_vm1, %v5222_v3  ;;  %v5445_v60 = vand.u32 4294901760, %v615_v56 }
  0x14   :  { %4314 = vmatmul.mubr.f32.gmra.mrb[2].mxu1 %v136_v32  ;;  %v5459_v16 = vsub.f32 %v618_v61, %v5454_v5 }
  0x15   :  { %4316 = vmatprep.mubr.msk.f32.mxu1 %vm5223_vm1, %v5222_v3  ;;  %1199 = vperm.xlu1 %5197, %v4060_v35  }
  0x16   :  { %4328 = vmatmul.mubr.f32.gmra.mrb[4].mxu0 %v5316_v22  ;;  %1204 = vperm.xlu0 %5196, %v4061_v37  }
  0x17   :  { %4332 = vmatprep.mubr.msk.f32.mxu0 %vm5223_vm1, %v5222_v3 }
  0x18   :  { %4317 = vmatmul.mubr.f32.gmra.mrb[4].mxu1 %v146_v36 }
  0x19   :  { %4380 = vmatprep.mubr.msk.f32.mxu1 %vm5223_vm1, %v5222_v3  ;;  %1787 = vperm.xlu1 %5197, %v4065_v38  }
  0x1a   :  { %4333 = vmatmul.mubr.f32.vlgmr.msra.gmra.mrb[0].mxu0 %v5297_v13  ;;  %1792 = vperm.xlu0 %5196, %v4066_v39  }
  0x1b   :  { %4335 = vmatprep.mubr.msk.f32.mxu0 %vm5223_vm1, %v5222_v3  ;;  %4342 = vmatpush3.msra.mxu0 %v5272_v4 }
  0x1c   :  { %4352 = vmatprep.subr.mxu0 %v5222_v3 }
  0x1d   :  { %1797 = vperm.xlu1 %5197, %v4067_v40  }
  0x1e   :  { %4336 = vmatmul.mubr.f32.gmra.mrb[2].mxu0 %v5307_v18  ;;  %2380 = vperm.xlu0 %5196, %v4071_v41  }
  0x1f   :  { %4338 = vmatprep.mubr.msk.f32.mxu0 %vm5223_vm1, %v5222_v3 }
  0x21   :  { %2385 = vperm.xlu1 %5197, %v4072_v42  }
  0x22   :  { %4339 = vmatmul.mubr.f32.gmra.mrb[4].mxu0 %v5323_v26  ;;  %2390 = vperm.xlu0 %5196, %v4073_v43   ;;  %v703_v26 = vand.u32 4294901760, %v5459_v16 }
  0x23   :  { %4343 = vmatprep.mubr.msk.f32.mxu0 %vm5223_vm1, %v5222_v3 }
  0x24   :  { %v704_v36 = vsub.f32 %v5459_v16, %v703_v26 }
  0x25   :  { %2973 = vperm.xlu1 %5197, %v4077_v44  }
  0x26   :  { %4344 = vmatmul.mubr.f32.vlgmr.msra.gmra.mrb[0].mxu0 %v124_v19  ;;  %2978 = vperm.xlu0 %5196, %v4078_v45   ;;  %v705_v44 = vand.u32 4294901760, %v704_v36 }
  0x27   :  { %4346 = vmatprep.mubr.msk.f32.mxu0 %vm5223_vm1, %v5222_v3  ;;  %4353 = vmatpush3.msra.mxu0 %v155_v15 }
  0x28   :  { %4363 = vmatprep.subr.mxu0 %v5222_v3 }
  0x29   :  { %2983 = vperm.xlu1 %5197, %v4079_v46  }
  0x2a   :  { %4347 = vmatmul.mubr.f32.gmra.mrb[2].mxu0 %v134_v23  ;;  %3560 = vperm.xlu0 %5196, %v3557_v47  }
  0x2b   :  { %4349 = vmatprep.mubr.msk.f32.mxu0 %vm5223_vm1, %v5222_v3 }
  0x2e   :  { %4350 = vmatmul.mubr.f32.gmra.mrb[4].mxu0 %v144_v29 }
  0x2f   :  { %4354 = vmatprep.mubr.msk.f32.mxu0 %vm5223_vm1, %v5222_v3 }
  0x32   :  { %4355 = vmatmul.mubr.f32.vlgmr.msra.gmra.mrb[0].mxu0 %v5281_v8 }
  0x33   :  { %4357 = vmatprep.mubr.msk.f32.mxu0 %vm5223_vm1, %v5222_v3  ;;  %4364 = vmatpush3.msra.mxu0 %v5272_v4  ;;  %v5452_v4 = vsub.f32 %v615_v56, %v5445_v60 }
  0x34   :  { %4896 = vmatprep.subr.bf16.mxu0 %v5225_v48 }
  0x35   :  { %v693_v15 = vand.u32 4294901760, %v5452_v4 }
  0x36   :  { %4358 = vmatmul.mubr.f32.gmra.mrb[2].mxu0 %v5299_v14 }
  0x37   :  { %4360 = vmatprep.mubr.msk.f32.mxu0 %vm5223_vm1, %v5222_v3  ;;  %v694_v25 = vsub.f32 %v5452_v4, %v693_v15 }
  0x39   :  { %v695_v35 = vand.u32 4294901760, %v694_v25 }
  0x3a   :  { %4361 = vmatmul.mubr.f32.gmra.mrb[4].mxu0 %v5316_v22 }
  0x3b   :  { %4365 = vmatprep.mubr.msk.f32.mxu0 %vm5223_vm1, %v5222_v3 }
  0x3e   :  { %4366 = vmatmul.mubr.f32.vlgmr.msra.gmra.mrb[0].mxu0 %v5281_v8  ;;  %v621_v8 = vsel %vm613_vm2, %v593_v63, 0 }
  0x3f   :  { %4368 = vmatprep.mubr.msk.f32.mxu0 %vm5223_vm1, %v5222_v3  ;;  %v5461_v17 = vand.u32 4294901760, %v621_v8 }
  0x41   :  { %v5468_v27 = vsub.f32 %v621_v8, %v5461_v17 }
  0x42   :  { %4369 = vmatmul.mubr.f32.gmra.mrb[2].mxu0 %v5299_v14 }
  0x43   :  { %4371 = vmatprep.mubr.msk.f32.mxu0 %vm5223_vm1, %v5222_v3  ;;  %v713_v37 = vand.u32 4294901760, %v5468_v27 }
  0x45   :  { %v714_v45 = vsub.f32 %v5468_v27, %v713_v37 }
  0x46   :  { %4372 = vmatmul.mubr.f32.gmra.mrb[4].mxu0 %v5316_v22 }
  0x47   :  { %4470 = vmatprep.mubr.msk.f32.mxu0 %vm5223_vm1, %v5222_v3 }
  0x83   :  { %v34_v57 = vpop.permute.xlu0 %33 }
  0x84   :  { %v44_v9 = vpop.permute.xlu1 %43 }
  0x87   :  { %v39_v2 = vpop.permute.xlu0 %38 }
  0x8a   :  { %v601_v56 = vpop.permute.xlu1 %600 }
  0xe3   :  { %v128_v49 = vpop.f32.mrb[0].mxu1 }
  0xe4   :  { %v4312_v50 = vpop.f32.mrb[1].mxu1  ;;  %v129_v59 = vadd.f32 %v128_v49, %v34_v57  ;;  %v715_v49 = vand.u32 4294901760, %v714_v45  ;;  %v4063_v45 = vld [vmem:[%s6020_s2 + $0x38] sm:$0xff] }
  0xe7   :  { %v138_v51 = vpop.f32.mrb[2].mxu1 }
  0xe8   :  { %v4315_v52 = vpop.f32.mrb[3].mxu1  ;;  %v139_v6 = vadd.f32 %v138_v51, %v39_v2  ;;  %v4056_v51 = vld [vmem:[%s6020_s2 + $0x18] sm:$0xff] }
  0xe9   :  { %v1208_v52 = vsel %vm613_vm2, %v4056_v51, 0  ;;  %v4064_v51 = vld [vmem:[%s6020_s2 + $0x40] sm:$0xff] }
  0xeb   :  { %v148_v53 = vpop.f32.mrb[4].mxu1 }
  0xec   :  { %v4318_v54 = vpop.f32.mrb[5].mxu1  ;;  %v149_v14 = vadd.f32 %v148_v53, %v44_v9  ;;  %v4057_v53 = vld [vmem:[%s6020_s2 + $0x20] sm:$0xff] }
  0xed   :  { %v5553_v54 = vand.u32 4294901760, %v1208_v52  ;;  %v1211_v55 = vsel %vm613_vm2, %v4057_v53, 0 }
  0xef   :  { %v5560_v61 = vsub.f32 %v1208_v52, %v5553_v54 }
 0x111   :  { %v572_v62 = vpop.f32.mrb[0].mxu0 }
 0x112   :  { %v4987_v0 = vadd.f32 %v572_v62, %v129_v59  ;;  %v4367_v1 = vpop.f32.mrb[1].mxu0  ;;  %v5562_v62 = vand.u32 4294901760, %v1211_v55 }
 0x113   :  { %v606_v1 = vpop.permute.xlu0 %605 }
 0x114   :  { %v588_v7 = vmax.f32 %v4987_v0, 0.0  ;;  %v1214_v0 = vsel %vm613_vm2, %v4058_v58, 0  ;;  %v5567_v8 = vsub.f32 %v1211_v55, %v5562_v62 }
 0x115   :  { %v578_v10 = vpop.f32.mrb[2].mxu0  ;;  %v5569_v9 = vand.u32 4294901760, %v1214_v0 }
 0x116   :  { %v624_v11 = vand.u32 4294901760, %v588_v7  ;;  %v4989_v12 = vadd.f32 %v578_v10, %v139_v6  ;;  %v4370_v13 = vpop.f32.mrb[3].mxu0 }
 0x118   :  { %v723_v18 = vsub.f32 %v588_v7, %v624_v11  ;;  %v589_v19 = vmax.f32 %v4989_v12, 0.0  ;;  %v1286_v7 = vand.u32 4294901760, %v5560_v61  ;;  %v611_v12 = vpop.permute.xlu1 %610 }
 0x119   :  { %v584_v20 = vpop.f32.mrb[4].mxu0 }
 0x11a   :  { %v724_v21 = vand.u32 4294901760, %v723_v18  ;;  %v627_v22 = vand.u32 4294901760, %v589_v19  ;;  %v4991_v23 = vadd.f32 %v584_v20, %v149_v14  ;;  %v4373_v24 = vpop.f32.mrb[5].mxu0  ;;  %v5576_v20 = vsub.f32 %v1214_v0, %v5569_v9 }
 0x11c   :  { %v5470_v28 = vpack.c.bf16 %v627_v22, %v624_v11  ;;  %v730_v29 = vsub.f32 %v589_v19, %v627_v22  ;;  %v590_v30 = vmax.f32 %v4991_v23, 0.0  ;;  %v725_v31 = vsub.f32 %v723_v18, %v724_v21  ;;  %v1200_v58 = vpop.permute.xlu1 %1199 }
 0x11d   :  { %v1296_v19 = vand.u32 4294901760, %v5567_v8 }
 0x11e   :  { %v731_v32 = vand.u32 4294901760, %v730_v29  ;;  %v5472_v33 = vand.u32 4294901760, %v590_v30  ;;  %4880 = vmatpush3.bf16.msra.mxu1 %v5470_v28  ;;  %v4885_v34 = vpack.c.bf16 %v730_v29, %v723_v18  ;;  %v726_v41 = vand.u32 4294901760, %v725_v31 }
 0x11f   :  { %4378 = vmatprep.subr.mxu1 %v5222_v3  ;;  %v1287_v18 = vsub.f32 %v5560_v61, %v1286_v7 }
 0x120   :  { %v732_v38 = vsub.f32 %v730_v29, %v731_v32  ;;  %v737_v39 = vsub.f32 %v590_v30, %v5472_v33  ;;  %v4891_v40 = vpack.c.bf16 %v731_v32, %v724_v21  ;;  %v1297_v29 = vsub.f32 %v5567_v8, %v1296_v19 }
 0x121   :  { %v1306_v30 = vand.u32 4294901760, %v5576_v20 }
 0x122   :  { %v733_v42 = vand.u32 4294901760, %v732_v38  ;;  %v738_v43 = vand.u32 4294901760, %v737_v39  ;;  %4379 = vmatpush3.msra.mxu1 %v5472_v33 }
 0x123   :  { %4381 = vmatmul.mubr.f32.vlgmr.msra.gmra.mrb[6].mxu1 %v695_v35  ;;  %4881 = vmatprep.subr.bf16.mxu1 %v5225_v48  ;;  %v1307_v38 = vsub.f32 %v5576_v20, %v1306_v30 }
 0x124   :  { %v739_v46 = vsub.f32 %v737_v39, %v738_v43  ;;  %4383 = vmatprep.mubr.msk.f32.mxu1 %vm5223_vm1, %v5222_v3  ;;  %v4882_v47 = vpack.c.bf16 %v733_v42, %v726_v41 }
 0x125   :  { %v1308_v41 = vand.u32 4294901760, %v1307_v38  ;;  %v4069_v38 = vld [vmem:[%s6020_s2 + $0x50] sm:$0xff] }
 0x126   :  { %4883 = vmatpush3.bf16.msra.mxu1 %v4882_v47  ;;  %v740_v50 = vand.u32 4294901760, %v739_v46  ;;  %v1804_v47 = vsel %vm613_vm2, %v4063_v45, 0 }
 0x127   :  { %4384 = vmatmul.mubr.f32.gmra.mrb[8].mxu1 %v705_v44  ;;  %4393 = vmatprep.subr.mxu1 %v5222_v3  ;;  %v5670_v55 = vand.u32 4294901760, %v1804_v47 }
 0x128   :  { %4386 = vmatprep.mubr.msk.f32.mxu1 %vm5223_vm1, %v5222_v3 }
 0x129   :  { %v5675_v0 = vsub.f32 %v1804_v47, %v5670_v55 }
 0x12a   :  { %4394 = vmatpush3.msra.mxu1 %v740_v50 }
 0x12b   :  { %4387 = vmatmul.mubr.f32.gmra.mrb[10].mxu1 %v715_v49  ;;  %4884 = vmatprep.subr.bf16.mxu1 %v5225_v48  ;;  %v1195_v49 = vpop.permute.xlu0 %1194 }
 0x12c   :  { %4395 = vmatprep.mubr.msk.f32.mxu1 %vm5223_vm1, %v5222_v3 }
 0x12f   :  { %4396 = vmatmul.mubr.f32.vlgmr.msra.gmra.mrb[6].mxu1 %v5445_v60 }
 0x130   :  { %4886 = vmatpush3.bf16.msra.mxu1 %v4885_v34  ;;  %4398 = vmatprep.mubr.msk.f32.mxu1 %vm5223_vm1, %v5222_v3 }
 0x131   :  { %4408 = vmatprep.subr.mxu1 %v5222_v3 }
 0x133   :  { %4399 = vmatmul.mubr.f32.gmra.mrb[8].mxu1 %v5454_v5 }
 0x134   :  { %4409 = vmatpush3.msra.mxu1 %v737_v39  ;;  %4401 = vmatprep.mubr.msk.f32.mxu1 %vm5223_vm1, %v5222_v3 }
 0x135   :  { %4887 = vmatprep.subr.bf16.mxu1 %v5225_v48 }
 0x137   :  { %4402 = vmatmul.mubr.f32.gmra.mrb[10].mxu1 %v5461_v17 }
 0x138   :  { %4410 = vmatprep.mubr.msk.f32.mxu1 %vm5223_vm1, %v5222_v3 }
 0x13b   :  { %4411 = vmatmul.mubr.f32.vlgmr.msra.gmra.mrb[6].mxu1 %v5452_v4 }
 0x13c   :  { %4889 = vmatpush3.bf16.msra.mxu1 %v5470_v28  ;;  %4413 = vmatprep.mubr.msk.f32.mxu1 %vm5223_vm1, %v5222_v3 }
 0x13d   :  { %4423 = vmatprep.subr.mxu1 %v5222_v3 }
 0x13f   :  { %4414 = vmatmul.mubr.f32.gmra.mrb[8].mxu1 %v5459_v16 }
 0x140   :  { %4424 = vmatpush3.msra.mxu1 %v5472_v33  ;;  %4416 = vmatprep.mubr.msk.f32.mxu1 %vm5223_vm1, %v5222_v3 }
 0x141   :  { %4890 = vmatprep.subr.bf16.mxu1 %v5225_v48 }
 0x143   :  { %4417 = vmatmul.mubr.f32.gmra.mrb[10].mxu1 %v5468_v27 }
 0x144   :  { %4425 = vmatprep.mubr.msk.f32.mxu1 %vm5223_vm1, %v5222_v3 }
 0x147   :  { %4426 = vmatmul.mubr.f32.vlgmr.msra.gmra.mrb[6].mxu1 %v693_v15 }
 0x148   :  { %4892 = vmatpush3.bf16.msra.mxu1 %v4891_v40  ;;  %4428 = vmatprep.mubr.msk.f32.mxu1 %vm5223_vm1, %v5222_v3 }
 0x149   :  { %4438 = vmatprep.subr.mxu1 %v5222_v3 }
 0x14b   :  { %4429 = vmatmul.mubr.f32.gmra.mrb[8].mxu1 %v703_v26 }
 0x14c   :  { %4439 = vmatpush3.msra.mxu1 %v738_v43  ;;  %4431 = vmatprep.mubr.msk.f32.mxu1 %vm5223_vm1, %v5222_v3  ;;  %v4062_v43 = vld [vmem:[%s6020_s2 + $0x30] sm:$0xff] }
 0x14d   :  { %4893 = vmatprep.subr.bf16.mxu1 %v5225_v48  ;;  %v1801_v44 = vsel %vm613_vm2, %v4062_v43, 0  ;;  %v4070_v43 = vld [vmem:[%s6020_s2 + $0x58] sm:$0xff] }
 0x14e   :  { %v5661_v46 = vand.u32 4294901760, %v1801_v44 }
 0x14f   :  { %4432 = vmatmul.mubr.f32.gmra.mrb[10].mxu1 %v713_v37  ;;  %v1298_v37 = vand.u32 4294901760, %v1297_v29 }
 0x150   :  { %4440 = vmatprep.mubr.msk.f32.mxu1 %vm5223_vm1, %v5222_v3 }
 0x153   :  { %4441 = vmatmul.mubr.f32.vlgmr.msra.gmra.mrb[6].mxu1 %v5445_v60 }
 0x154   :  { %4895 = vmatpush3.bf16.msra.mxu1 %v5470_v28  ;;  %4443 = vmatprep.mubr.msk.f32.mxu1 %vm5223_vm1, %v5222_v3  ;;  %v1288_v28 = vand.u32 4294901760, %v1287_v18 }
 0x155   :  { %4453 = vmatprep.subr.mxu1 %v5222_v3 }
 0x157   :  { %4444 = vmatmul.mubr.f32.gmra.mrb[8].mxu1 %v5454_v5 }
 0x158   :  { %4454 = vmatpush3.msra.mxu1 %v5472_v33  ;;  %4446 = vmatprep.mubr.msk.f32.mxu1 %vm5223_vm1, %v5222_v3 }
 0x159   :  { %4914 = vmatprep.subr.bf16.mxu1 %v5225_v48 }
 0x15b   :  { %4447 = vmatmul.mubr.f32.gmra.mrb[10].mxu1 %v5461_v17 }
 0x15c   :  { %4455 = vmatprep.mubr.msk.f32.mxu1 %vm5223_vm1, %v5222_v3 }
 0x15f   :  { %4456 = vmatmul.mubr.f32.vlgmr.msra.gmra.mrb[6].mxu1 %v5445_v60 }
 0x160   :  { %4458 = vmatprep.mubr.msk.f32.mxu1 %vm5223_vm1, %v5222_v3 }
 0x163   :  { %4459 = vmatmul.mubr.f32.gmra.mrb[8].mxu1 %v5454_v5 }
 0x164   :  { %4461 = vmatprep.mubr.msk.f32.mxu1 %vm5223_vm1, %v5222_v3 }
 0x167   :  { %4462 = vmatmul.mubr.f32.gmra.mrb[10].mxu1 %v5461_v17 }
 0x168   :  { %4560 = vmatprep.mubr.msk.f32.mxu1 %vm5223_vm1, %v5222_v3 }
 0x232   :  { %v1165_v57 = vpop.f32.mrb[6].mxu1 }
 0x233   :  { %v4992_v59 = vadd.f32 %v1165_v57, %v601_v56  ;;  %v4457_v60 = vpop.f32.mrb[7].mxu1  ;;  %v1807_v57 = vsel %vm613_vm2, %v4064_v51, 0 }
 0x235   :  { %v1181_v63 = vmax.f32 %v4992_v59, 0.0 }
 0x236   :  { %v1171_v2 = vpop.f32.mrb[8].mxu1 }
 0x237   :  { %v1217_v4 = vand.u32 4294901760, %v1181_v63  ;;  %v4993_v5 = vadd.f32 %v1171_v2, %v606_v1  ;;  %v4460_v6 = vpop.f32.mrb[9].mxu1  ;;  %v5677_v1 = vand.u32 4294901760, %v1807_v57 }
 0x239   :  { %v1316_v10 = vsub.f32 %v1181_v63, %v1217_v4  ;;  %v1182_v11 = vmax.f32 %v4993_v5, 0.0  ;;  %v1205_v5 = vpop.permute.xlu0 %1204 }
 0x23a   :  { %v1177_v13 = vpop.f32.mrb[10].mxu1 }
 0x23b   :  { %v1317_v14 = vand.u32 4294901760, %v1316_v10  ;;  %v1220_v15 = vand.u32 4294901760, %v1182_v11  ;;  %v4994_v16 = vadd.f32 %v1177_v13, %v611_v12  ;;  %v4463_v17 = vpop.f32.mrb[11].mxu1  ;;  %v1889_v12 = vand.u32 4294901760, %v5675_v0 }
 0x23c   :  { %v5684_v13 = vsub.f32 %v1807_v57, %v5677_v1 }
 0x23d   :  { %v5578_v21 = vpack.c.bf16 %v1220_v15, %v1217_v4  ;;  %v1323_v22 = vsub.f32 %v1182_v11, %v1220_v15  ;;  %v1183_v23 = vmax.f32 %v4994_v16, 0.0  ;;  %v1318_v24 = vsub.f32 %v1316_v10, %v1317_v14  ;;  %v1793_v51 = vpop.permute.xlu0 %1792 }
 0x23f   :  { %v1324_v25 = vand.u32 4294901760, %v1323_v22  ;;  %v5580_v26 = vand.u32 4294901760, %v1183_v23  ;;  %4898 = vmatpush3.bf16.msra.mxu0 %v5578_v21  ;;  %v4903_v27 = vpack.c.bf16 %v1323_v22, %v1316_v10  ;;  %v1319_v34 = vand.u32 4294901760, %v1318_v24 }
 0x240   :  { %4468 = vmatprep.subr.mxu0 %v5222_v3 }
 0x241   :  { %v1325_v31 = vsub.f32 %v1323_v22, %v1324_v25  ;;  %v1330_v32 = vsub.f32 %v1183_v23, %v5580_v26  ;;  %v4909_v33 = vpack.c.bf16 %v1324_v25, %v1317_v14  ;;  %v1890_v22 = vsub.f32 %v5675_v0, %v1889_v12 }
 0x242   :  { %v1899_v23 = vand.u32 4294901760, %v5684_v13 }
 0x243   :  { %v1326_v35 = vand.u32 4294901760, %v1325_v31  ;;  %v1331_v36 = vand.u32 4294901760, %v1330_v32  ;;  %4469 = vmatpush3.msra.mxu0 %v5580_v26 }
 0x244   :  { %4471 = vmatmul.mubr.f32.vlgmr.msra.gmra.mrb[6].mxu0 %v1288_v28  ;;  %4899 = vmatprep.subr.bf16.mxu0 %v5225_v48  ;;  %v1900_v31 = vsub.f32 %v5684_v13, %v1899_v23 }
 0x245   :  { %v1332_v39 = vsub.f32 %v1330_v32, %v1331_v36  ;;  %4473 = vmatprep.mubr.msk.f32.mxu0 %vm5223_vm1, %v5222_v3  ;;  %v4900_v40 = vpack.c.bf16 %v1326_v35, %v1319_v34 }
 0x246   :  { %v1901_v34 = vand.u32 4294901760, %v1900_v31  ;;  %v4075_v31 = vld [vmem:[%s6020_s2 + $0x68] sm:$0xff] }
 0x247   :  { %4901 = vmatpush3.bf16.msra.mxu0 %v4900_v40  ;;  %v1333_v42 = vand.u32 4294901760, %v1332_v39  ;;  %v2397_v40 = vsel %vm613_vm2, %v4069_v38, 0 }
 0x248   :  { %4474 = vmatmul.mubr.f32.gmra.mrb[8].mxu0 %v1298_v37  ;;  %4483 = vmatprep.subr.mxu0 %v5222_v3  ;;  %v5778_v47 = vand.u32 4294901760, %v2397_v40 }
 0x249   :  { %4476 = vmatprep.mubr.msk.f32.mxu0 %vm5223_vm1, %v5222_v3 }
 0x24a   :  { %v5783_v57 = vsub.f32 %v2397_v40, %v5778_v47 }
 0x24b   :  { %4484 = vmatpush3.msra.mxu0 %v1333_v42 }
 0x24c   :  { %4477 = vmatmul.mubr.f32.gmra.mrb[10].mxu0 %v1308_v41  ;;  %4902 = vmatprep.subr.bf16.mxu0 %v5225_v48  ;;  %v1788_v41 = vpop.permute.xlu1 %1787 }
 0x24d   :  { %4485 = vmatprep.mubr.msk.f32.mxu0 %vm5223_vm1, %v5222_v3 }
 0x250   :  { %4486 = vmatmul.mubr.f32.vlgmr.msra.gmra.mrb[6].mxu0 %v5553_v54 }
 0x251   :  { %4904 = vmatpush3.bf16.msra.mxu0 %v4903_v27  ;;  %4488 = vmatprep.mubr.msk.f32.mxu0 %vm5223_vm1, %v5222_v3 }
 0x252   :  { %4498 = vmatprep.subr.mxu0 %v5222_v3 }
 0x254   :  { %4489 = vmatmul.mubr.f32.gmra.mrb[8].mxu0 %v5562_v62 }
 0x255   :  { %4499 = vmatpush3.msra.mxu0 %v1330_v32  ;;  %4491 = vmatprep.mubr.msk.f32.mxu0 %vm5223_vm1, %v5222_v3 }
 0x256   :  { %4905 = vmatprep.subr.bf16.mxu0 %v5225_v48 }
 0x258   :  { %4492 = vmatmul.mubr.f32.gmra.mrb[10].mxu0 %v5569_v9 }
 0x259   :  { %4500 = vmatprep.mubr.msk.f32.mxu0 %vm5223_vm1, %v5222_v3 }
 0x25c   :  { %4501 = vmatmul.mubr.f32.vlgmr.msra.gmra.mrb[6].mxu0 %v5560_v61 }
 0x25d   :  { %4907 = vmatpush3.bf16.msra.mxu0 %v5578_v21  ;;  %4503 = vmatprep.mubr.msk.f32.mxu0 %vm5223_vm1, %v5222_v3 }
 0x25e   :  { %4513 = vmatprep.subr.mxu0 %v5222_v3 }
 0x260   :  { %4504 = vmatmul.mubr.f32.gmra.mrb[8].mxu0 %v5567_v8 }
 0x261   :  { %4514 = vmatpush3.msra.mxu0 %v5580_v26  ;;  %4506 = vmatprep.mubr.msk.f32.mxu0 %vm5223_vm1, %v5222_v3 }
 0x262   :  { %4908 = vmatprep.subr.bf16.mxu0 %v5225_v48 }
 0x264   :  { %4507 = vmatmul.mubr.f32.gmra.mrb[10].mxu0 %v5576_v20 }
 0x265   :  { %4515 = vmatprep.mubr.msk.f32.mxu0 %vm5223_vm1, %v5222_v3 }
 0x268   :  { %4516 = vmatmul.mubr.f32.vlgmr.msra.gmra.mrb[6].mxu0 %v1286_v7 }
 0x269   :  { %4910 = vmatpush3.bf16.msra.mxu0 %v4909_v33  ;;  %4518 = vmatprep.mubr.msk.f32.mxu0 %vm5223_vm1, %v5222_v3 }
 0x26a   :  { %4528 = vmatprep.subr.mxu0 %v5222_v3 }
 0x26c   :  { %4519 = vmatmul.mubr.f32.gmra.mrb[8].mxu0 %v1296_v19 }
 0x26d   :  { %4529 = vmatpush3.msra.mxu0 %v1331_v36  ;;  %4521 = vmatprep.mubr.msk.f32.mxu0 %vm5223_vm1, %v5222_v3  ;;  %v4068_v36 = vld [vmem:[%s6020_s2 + $0x48] sm:$0xff] }
 0x26e   :  { %4911 = vmatprep.subr.bf16.mxu0 %v5225_v48  ;;  %v2394_v37 = vsel %vm613_vm2, %v4068_v36, 0  ;;  %v4076_v36 = vld [vmem:[%s6020_s2 + $0x70] sm:$0xff] }
 0x26f   :  { %v5769_v39 = vand.u32 4294901760, %v2394_v37 }
 0x270   :  { %4522 = vmatmul.mubr.f32.gmra.mrb[10].mxu0 %v1306_v30  ;;  %v1891_v30 = vand.u32 4294901760, %v1890_v22 }
 0x271   :  { %4530 = vmatprep.mubr.msk.f32.mxu0 %vm5223_vm1, %v5222_v3 }
 0x274   :  { %4531 = vmatmul.mubr.f32.vlgmr.msra.gmra.mrb[6].mxu0 %v5553_v54 }
 0x275   :  { %4913 = vmatpush3.bf16.msra.mxu0 %v5578_v21  ;;  %4533 = vmatprep.mubr.msk.f32.mxu0 %vm5223_vm1, %v5222_v3 }
 0x276   :  { %4543 = vmatprep.subr.mxu0 %v5222_v3 }
 0x278   :  { %4534 = vmatmul.mubr.f32.gmra.mrb[8].mxu0 %v5562_v62 }
 0x279   :  { %4544 = vmatpush3.msra.mxu0 %v5580_v26  ;;  %4536 = vmatprep.mubr.msk.f32.mxu0 %vm5223_vm1, %v5222_v3 }
 0x27a   :  { %4932 = vmatprep.subr.bf16.mxu0 %v5225_v48 }
 0x27c   :  { %4537 = vmatmul.mubr.f32.gmra.mrb[10].mxu0 %v5569_v9 }
 0x27d   :  { %4545 = vmatprep.mubr.msk.f32.mxu0 %vm5223_vm1, %v5222_v3 }
 0x280   :  { %4546 = vmatmul.mubr.f32.vlgmr.msra.gmra.mrb[6].mxu0 %v5553_v54  ;;  %v5668_v54 = vsub.f32 %v1801_v44, %v5661_v46 }
 0x281   :  { %4548 = vmatprep.mubr.msk.f32.mxu0 %vm5223_vm1, %v5222_v3 }
 0x282   :  { %v1879_v63 = vand.u32 4294901760, %v5668_v54 }
 0x284   :  { %4549 = vmatmul.mubr.f32.gmra.mrb[8].mxu0 %v5562_v62  ;;  %v1880_v11 = vsub.f32 %v5668_v54, %v1879_v63 }
 0x285   :  { %4551 = vmatprep.mubr.msk.f32.mxu0 %vm5223_vm1, %v5222_v3 }
 0x286   :  { %v1881_v21 = vand.u32 4294901760, %v1880_v11 }
 0x288   :  { %4552 = vmatmul.mubr.f32.gmra.mrb[10].mxu0 %v5569_v9 }
 0x289   :  { %4650 = vmatprep.mubr.msk.f32.mxu0 %vm5223_vm1, %v5222_v3 }
 0x353   :  { %v1758_v50 = vpop.f32.mrb[6].mxu0 }
 0x354   :  { %v4995_v52 = vadd.f32 %v1758_v50, %v1195_v49  ;;  %v4547_v53 = vpop.f32.mrb[7].mxu0  ;;  %v2400_v50 = vsel %vm613_vm2, %v4070_v43, 0 }
 0x356   :  { %v1774_v56 = vmax.f32 %v4995_v52, 0.0 }
 0x357   :  { %v1764_v59 = vpop.f32.mrb[8].mxu0 }
 0x358   :  { %v1810_v60 = vand.u32 4294901760, %v1774_v56  ;;  %v4996_v61 = vadd.f32 %v1764_v59, %v1200_v58  ;;  %v4550_v62 = vpop.f32.mrb[9].mxu0  ;;  %v5785_v58 = vand.u32 4294901760, %v2400_v50 }
 0x35a   :  { %v1909_v2 = vsub.f32 %v1774_v56, %v1810_v60  ;;  %v1775_v4 = vmax.f32 %v4996_v61, 0.0  ;;  %v1798_v61 = vpop.permute.xlu1 %1797 }
 0x35b   :  { %v1770_v6 = vpop.f32.mrb[10].mxu0 }
 0x35c   :  { %v1910_v7 = vand.u32 4294901760, %v1909_v2  ;;  %v1813_v8 = vand.u32 4294901760, %v1775_v4  ;;  %v4997_v9 = vadd.f32 %v1770_v6, %v1205_v5  ;;  %v4553_v10 = vpop.f32.mrb[11].mxu0  ;;  %v2482_v5 = vand.u32 4294901760, %v5783_v57 }
 0x35d   :  { %v5792_v6 = vsub.f32 %v2400_v50, %v5785_v58 }
 0x35e   :  { %v5686_v14 = vpack.c.bf16 %v1813_v8, %v1810_v60  ;;  %v1916_v15 = vsub.f32 %v1775_v4, %v1813_v8  ;;  %v1776_v16 = vmax.f32 %v4997_v9, 0.0  ;;  %v1911_v17 = vsub.f32 %v1909_v2, %v1910_v7  ;;  %v2386_v43 = vpop.permute.xlu1 %2385 }
 0x360   :  { %v1917_v18 = vand.u32 4294901760, %v1916_v15  ;;  %v5688_v19 = vand.u32 4294901760, %v1776_v16  ;;  %4916 = vmatpush3.bf16.msra.mxu1 %v5686_v14  ;;  %v4921_v20 = vpack.c.bf16 %v1916_v15, %v1909_v2  ;;  %v1912_v27 = vand.u32 4294901760, %v1911_v17 }
 0x361   :  { %4558 = vmatprep.subr.mxu1 %v5222_v3 }
 0x362   :  { %v1918_v24 = vsub.f32 %v1916_v15, %v1917_v18  ;;  %v1923_v25 = vsub.f32 %v1776_v16, %v5688_v19  ;;  %v4927_v26 = vpack.c.bf16 %v1917_v18, %v1910_v7  ;;  %v2483_v15 = vsub.f32 %v5783_v57, %v2482_v5 }
 0x363   :  { %v2492_v16 = vand.u32 4294901760, %v5792_v6 }
 0x364   :  { %v1919_v28 = vand.u32 4294901760, %v1918_v24  ;;  %v1924_v29 = vand.u32 4294901760, %v1923_v25  ;;  %4559 = vmatpush3.msra.mxu1 %v5688_v19 }
 0x365   :  { %4561 = vmatmul.mubr.f32.vlgmr.msra.gmra.mrb[12].mxu1 %v1881_v21  ;;  %4917 = vmatprep.subr.bf16.mxu1 %v5225_v48  ;;  %v2493_v24 = vsub.f32 %v5792_v6, %v2492_v16 }
 0x366   :  { %v1925_v32 = vsub.f32 %v1923_v25, %v1924_v29  ;;  %4563 = vmatprep.mubr.msk.f32.mxu1 %vm5223_vm1, %v5222_v3  ;;  %v4918_v33 = vpack.c.bf16 %v1919_v28, %v1912_v27 }
 0x367   :  { %v2494_v27 = vand.u32 4294901760, %v2493_v24 }
 0x368   :  { %4919 = vmatpush3.bf16.msra.mxu1 %v4918_v33  ;;  %v1926_v35 = vand.u32 4294901760, %v1925_v32  ;;  %v2990_v33 = vsel %vm613_vm2, %v4075_v31, 0 }
 0x369   :  { %4564 = vmatmul.mubr.f32.gmra.mrb[14].mxu1 %v1891_v30  ;;  %4573 = vmatprep.subr.mxu1 %v5222_v3  ;;  %v5886_v40 = vand.u32 4294901760, %v2990_v33 }
 0x36a   :  { %4566 = vmatprep.mubr.msk.f32.mxu1 %vm5223_vm1, %v5222_v3 }
 0x36b   :  { %v5891_v50 = vsub.f32 %v2990_v33, %v5886_v40 }
 0x36c   :  { %4574 = vmatpush3.msra.mxu1 %v1926_v35 }
 0x36d   :  { %4567 = vmatmul.mubr.f32.gmra.mrb[16].mxu1 %v1901_v34  ;;  %4920 = vmatprep.subr.bf16.mxu1 %v5225_v48  ;;  %v2381_v34 = vpop.permute.xlu0 %2380 }
 0x36e   :  { %4575 = vmatprep.mubr.msk.f32.mxu1 %vm5223_vm1, %v5222_v3 }
 0x371   :  { %4576 = vmatmul.mubr.f32.vlgmr.msra.gmra.mrb[12].mxu1 %v5661_v46 }
 0x372   :  { %4922 = vmatpush3.bf16.msra.mxu1 %v4921_v20  ;;  %4578 = vmatprep.mubr.msk.f32.mxu1 %vm5223_vm1, %v5222_v3 }
 0x373   :  { %4588 = vmatprep.subr.mxu1 %v5222_v3 }
 0x375   :  { %4579 = vmatmul.mubr.f32.gmra.mrb[14].mxu1 %v5670_v55 }
 0x376   :  { %4589 = vmatpush3.msra.mxu1 %v1923_v25  ;;  %4581 = vmatprep.mubr.msk.f32.mxu1 %vm5223_vm1, %v5222_v3 }
 0x377   :  { %4923 = vmatprep.subr.bf16.mxu1 %v5225_v48 }
 0x379   :  { %4582 = vmatmul.mubr.f32.gmra.mrb[16].mxu1 %v5677_v1 }
 0x37a   :  { %4590 = vmatprep.mubr.msk.f32.mxu1 %vm5223_vm1, %v5222_v3 }
 0x37d   :  { %4591 = vmatmul.mubr.f32.vlgmr.msra.gmra.mrb[12].mxu1 %v5668_v54 }
 0x37e   :  { %4925 = vmatpush3.bf16.msra.mxu1 %v5686_v14  ;;  %4593 = vmatprep.mubr.msk.f32.mxu1 %vm5223_vm1, %v5222_v3 }
 0x37f   :  { %4603 = vmatprep.subr.mxu1 %v5222_v3 }
 0x381   :  { %4594 = vmatmul.mubr.f32.gmra.mrb[14].mxu1 %v5675_v0 }
 0x382   :  { %4604 = vmatpush3.msra.mxu1 %v5688_v19  ;;  %4596 = vmatprep.mubr.msk.f32.mxu1 %vm5223_vm1, %v5222_v3 }
 0x383   :  { %4926 = vmatprep.subr.bf16.mxu1 %v5225_v48 }
 0x385   :  { %4597 = vmatmul.mubr.f32.gmra.mrb[16].mxu1 %v5684_v13 }
 0x386   :  { %4605 = vmatprep.mubr.msk.f32.mxu1 %vm5223_vm1, %v5222_v3 }
 0x389   :  { %4606 = vmatmul.mubr.f32.vlgmr.msra.gmra.mrb[12].mxu1 %v1879_v63 }
 0x38a   :  { %4928 = vmatpush3.bf16.msra.mxu1 %v4927_v26  ;;  %4608 = vmatprep.mubr.msk.f32.mxu1 %vm5223_vm1, %v5222_v3 }
 0x38b   :  { %4618 = vmatprep.subr.mxu1 %v5222_v3 }
 0x38d   :  { %4609 = vmatmul.mubr.f32.gmra.mrb[14].mxu1 %v1889_v12 }
 0x38e   :  { %4619 = vmatpush3.msra.mxu1 %v1924_v29  ;;  %4611 = vmatprep.mubr.msk.f32.mxu1 %vm5223_vm1, %v5222_v3  ;;  %v4074_v29 = vld [vmem:[%s6020_s2 + $0x60] sm:$0xff] }
 0x38f   :  { %4929 = vmatprep.subr.bf16.mxu1 %v5225_v48  ;;  %v2987_v30 = vsel %vm613_vm2, %v4074_v29, 0 }
 0x390   :  { %v5877_v32 = vand.u32 4294901760, %v2987_v30 }
 0x391   :  { %4612 = vmatmul.mubr.f32.gmra.mrb[16].mxu1 %v1899_v23  ;;  %v2484_v23 = vand.u32 4294901760, %v2483_v15 }
 0x392   :  { %4620 = vmatprep.mubr.msk.f32.mxu1 %vm5223_vm1, %v5222_v3 }
 0x395   :  { %4621 = vmatmul.mubr.f32.vlgmr.msra.gmra.mrb[12].mxu1 %v5661_v46 }
 0x396   :  { %4931 = vmatpush3.bf16.msra.mxu1 %v5686_v14  ;;  %4623 = vmatprep.mubr.msk.f32.mxu1 %vm5223_vm1, %v5222_v3 }
 0x397   :  { %4633 = vmatprep.subr.mxu1 %v5222_v3 }
 0x399   :  { %4624 = vmatmul.mubr.f32.gmra.mrb[14].mxu1 %v5670_v55 }
 0x39a   :  { %4634 = vmatpush3.msra.mxu1 %v5688_v19  ;;  %4626 = vmatprep.mubr.msk.f32.mxu1 %vm5223_vm1, %v5222_v3 }
 0x39b   :  { %4950 = vmatprep.subr.bf16.mxu1 %v5225_v48 }
 0x39d   :  { %4627 = vmatmul.mubr.f32.gmra.mrb[16].mxu1 %v5677_v1 }
 0x39e   :  { %4635 = vmatprep.mubr.msk.f32.mxu1 %vm5223_vm1, %v5222_v3 }
 0x3a1   :  { %4636 = vmatmul.mubr.f32.vlgmr.msra.gmra.mrb[12].mxu1 %v5661_v46  ;;  %v5776_v46 = vsub.f32 %v2394_v37, %v5769_v39 }
 0x3a2   :  { %4638 = vmatprep.mubr.msk.f32.mxu1 %vm5223_vm1, %v5222_v3 }
 0x3a3   :  { %v2472_v56 = vand.u32 4294901760, %v5776_v46 }
 0x3a5   :  { %4639 = vmatmul.mubr.f32.gmra.mrb[14].mxu1 %v5670_v55  ;;  %v2473_v4 = vsub.f32 %v5776_v46, %v2472_v56 }
 0x3a6   :  { %4641 = vmatprep.mubr.msk.f32.mxu1 %vm5223_vm1, %v5222_v3 }
 0x3a7   :  { %v2474_v14 = vand.u32 4294901760, %v2473_v4 }
 0x3a9   :  { %4642 = vmatmul.mubr.f32.gmra.mrb[16].mxu1 %v5677_v1 }
 0x3aa   :  { %4740 = vmatprep.mubr.msk.f32.mxu1 %vm5223_vm1, %v5222_v3 }
 0x474   :  { %v2351_v42 = vpop.f32.mrb[12].mxu1 }
 0x475   :  { %v4998_v44 = vadd.f32 %v2351_v42, %v1788_v41  ;;  %v4637_v45 = vpop.f32.mrb[13].mxu1  ;;  %v2993_v42 = vsel %vm613_vm2, %v4076_v36, 0 }
 0x477   :  { %v2367_v49 = vmax.f32 %v4998_v44, 0.0 }
 0x478   :  { %v2357_v52 = vpop.f32.mrb[14].mxu1 }
 0x479   :  { %v2403_v53 = vand.u32 4294901760, %v2367_v49  ;;  %v4999_v54 = vadd.f32 %v2357_v52, %v1793_v51  ;;  %v4640_v55 = vpop.f32.mrb[15].mxu1  ;;  %v5893_v51 = vand.u32 4294901760, %v2993_v42 }
 0x47b   :  { %v2502_v59 = vsub.f32 %v2367_v49, %v2403_v53  ;;  %v2368_v60 = vmax.f32 %v4999_v54, 0.0  ;;  %v2391_v54 = vpop.permute.xlu0 %2390 }
 0x47c   :  { %v2363_v62 = vpop.f32.mrb[16].mxu1 }
 0x47d   :  { %v2503_v63 = vand.u32 4294901760, %v2502_v59  ;;  %v2406_v0 = vand.u32 4294901760, %v2368_v60  ;;  %v5000_v1 = vadd.f32 %v2363_v62, %v1798_v61  ;;  %v4643_v2 = vpop.f32.mrb[17].mxu1  ;;  %v3075_v61 = vand.u32 4294901760, %v5891_v50 }
 0x47e   :  { %v5900_v62 = vsub.f32 %v2993_v42, %v5893_v51 }
 0x47f   :  { %v5794_v7 = vpack.c.bf16 %v2406_v0, %v2403_v53  ;;  %v2509_v8 = vsub.f32 %v2368_v60, %v2406_v0  ;;  %v2369_v9 = vmax.f32 %v5000_v1, 0.0  ;;  %v2504_v10 = vsub.f32 %v2502_v59, %v2503_v63  ;;  %v2979_v31 = vpop.permute.xlu0 %2978 }
 0x481   :  { %v2510_v11 = vand.u32 4294901760, %v2509_v8  ;;  %v5796_v12 = vand.u32 4294901760, %v2369_v9  ;;  %4934 = vmatpush3.bf16.msra.mxu0 %v5794_v7  ;;  %v4939_v13 = vpack.c.bf16 %v2509_v8, %v2502_v59  ;;  %v2505_v20 = vand.u32 4294901760, %v2504_v10 }
 0x482   :  { %4648 = vmatprep.subr.mxu0 %v5222_v3 }
 0x483   :  { %v2511_v17 = vsub.f32 %v2509_v8, %v2510_v11  ;;  %v2516_v18 = vsub.f32 %v2369_v9, %v5796_v12  ;;  %v4945_v19 = vpack.c.bf16 %v2510_v11, %v2503_v63  ;;  %v3076_v8 = vsub.f32 %v5891_v50, %v3075_v61 }
 0x484   :  { %v3085_v9 = vand.u32 4294901760, %v5900_v62 }
 0x485   :  { %v2512_v21 = vand.u32 4294901760, %v2511_v17  ;;  %v2517_v22 = vand.u32 4294901760, %v2516_v18  ;;  %4649 = vmatpush3.msra.mxu0 %v5796_v12 }
 0x486   :  { %4651 = vmatmul.mubr.f32.vlgmr.msra.gmra.mrb[12].mxu0 %v2474_v14  ;;  %4935 = vmatprep.subr.bf16.mxu0 %v5225_v48  ;;  %v3086_v17 = vsub.f32 %v5900_v62, %v3085_v9 }
 0x487   :  { %v2518_v25 = vsub.f32 %v2516_v18, %v2517_v22  ;;  %4653 = vmatprep.mubr.msk.f32.mxu0 %vm5223_vm1, %v5222_v3  ;;  %v4936_v26 = vpack.c.bf16 %v2512_v21, %v2505_v20 }
 0x488   :  { %v3087_v20 = vand.u32 4294901760, %v3086_v17 }
 0x489   :  { %4937 = vmatpush3.bf16.msra.mxu0 %v4936_v26  ;;  %v2519_v28 = vand.u32 4294901760, %v2518_v25  ;;  %v2974_v25 = vpop.permute.xlu1 %2973 }
 0x48a   :  { %4654 = vmatmul.mubr.f32.gmra.mrb[14].mxu0 %v2484_v23  ;;  %4663 = vmatprep.subr.mxu0 %v5222_v3 }
 0x48b   :  { %4656 = vmatprep.mubr.msk.f32.mxu0 %vm5223_vm1, %v5222_v3 }
 0x48d   :  { %4664 = vmatpush3.msra.mxu0 %v2519_v28 }
 0x48e   :  { %4657 = vmatmul.mubr.f32.gmra.mrb[16].mxu0 %v2494_v27  ;;  %4938 = vmatprep.subr.bf16.mxu0 %v5225_v48 }
 0x48f   :  { %4665 = vmatprep.mubr.msk.f32.mxu0 %vm5223_vm1, %v5222_v3 }
 0x492   :  { %4666 = vmatmul.mubr.f32.vlgmr.msra.gmra.mrb[12].mxu0 %v5769_v39 }
 0x493   :  { %4940 = vmatpush3.bf16.msra.mxu0 %v4939_v13  ;;  %4668 = vmatprep.mubr.msk.f32.mxu0 %vm5223_vm1, %v5222_v3 }
 0x494   :  { %4678 = vmatprep.subr.mxu0 %v5222_v3 }
 0x496   :  { %4669 = vmatmul.mubr.f32.gmra.mrb[14].mxu0 %v5778_v47 }
 0x497   :  { %4679 = vmatpush3.msra.mxu0 %v2516_v18  ;;  %4671 = vmatprep.mubr.msk.f32.mxu0 %vm5223_vm1, %v5222_v3 }
 0x498   :  { %4941 = vmatprep.subr.bf16.mxu0 %v5225_v48 }
 0x49a   :  { %4672 = vmatmul.mubr.f32.gmra.mrb[16].mxu0 %v5785_v58 }
 0x49b   :  { %4680 = vmatprep.mubr.msk.f32.mxu0 %vm5223_vm1, %v5222_v3 }
 0x49e   :  { %4681 = vmatmul.mubr.f32.vlgmr.msra.gmra.mrb[12].mxu0 %v5776_v46 }
 0x49f   :  { %4943 = vmatpush3.bf16.msra.mxu0 %v5794_v7  ;;  %4683 = vmatprep.mubr.msk.f32.mxu0 %vm5223_vm1, %v5222_v3 }
 0x4a0   :  { %4693 = vmatprep.subr.mxu0 %v5222_v3 }
 0x4a2   :  { %4684 = vmatmul.mubr.f32.gmra.mrb[14].mxu0 %v5783_v57 }
 0x4a3   :  { %4694 = vmatpush3.msra.mxu0 %v5796_v12  ;;  %4686 = vmatprep.mubr.msk.f32.mxu0 %vm5223_vm1, %v5222_v3 }
 0x4a4   :  { %4944 = vmatprep.subr.bf16.mxu0 %v5225_v48 }
 0x4a6   :  { %4687 = vmatmul.mubr.f32.gmra.mrb[16].mxu0 %v5792_v6 }
 0x4a7   :  { %4695 = vmatprep.mubr.msk.f32.mxu0 %vm5223_vm1, %v5222_v3 }
 0x4aa   :  { %4696 = vmatmul.mubr.f32.vlgmr.msra.gmra.mrb[12].mxu0 %v2472_v56 }
 0x4ab   :  { %4946 = vmatpush3.bf16.msra.mxu0 %v4945_v19  ;;  %4698 = vmatprep.mubr.msk.f32.mxu0 %vm5223_vm1, %v5222_v3 }
 0x4ac   :  { %4708 = vmatprep.subr.mxu0 %v5222_v3 }
 0x4ae   :  { %4699 = vmatmul.mubr.f32.gmra.mrb[14].mxu0 %v2482_v5 }
 0x4af   :  { %4709 = vmatpush3.msra.mxu0 %v2517_v22  ;;  %4701 = vmatprep.mubr.msk.f32.mxu0 %vm5223_vm1, %v5222_v3  ;;  %v3556_v22 = vld [vmem:[%s6021_s3] sm:$0xff]  ;;  %s5226_s3 = smov [#allocation2]  }
 0x4b0   :  { %4947 = vmatprep.subr.bf16.mxu0 %v5225_v48  ;;  %v3564_v23 = vsel %vm613_vm2, %v3556_v22, 0  ;;  %s4045_s16 = sshll.u32 %s5226_s3, 4  ;;  %s4046_s16 = int_to_ptr.vmem [resolvable:$true] %s4045_s16 }
 0x4b1   :  { %v5982_v24 = vand.u32 4294901760, %v3564_v23  ;;  %s5198_s17 = scalar_lea.vmem %s4046_s16, 128  ;;  %p5203_p1 = scmp.lt.s32.totalorder %s4046_s16, %s4046_s16 }
 0x4b2   :  { %4702 = vmatmul.mubr.f32.gmra.mrb[16].mxu0 %v2492_v16  ;;  %v3077_v16 = vand.u32 4294901760, %v3076_v8  ;;  %p5199_p0 = scmp.ne.s32.totalorder %s4046_s16, %s5198_s17  ;;  %p5204_p2 = scmp.lt.s32.totalorder %s5198_s17, %s5198_s17 }
 0x4b3   :  { %4710 = vmatprep.mubr.msk.f32.mxu0 %vm5223_vm1, %v5222_v3  ;;  %v3635_v29 = vsub.f32 %v3564_v23, %v5982_v24 }
 0x4b4   :  { %p5205_p3 = por %p5204_p2, %p5203_p1 }
 0x4b5   :  { %v3636_v36 = vand.u32 4294901760, %v3635_v29 }
 0x4b6   :  { %4711 = vmatmul.mubr.f32.vlgmr.msra.gmra.mrb[12].mxu0 %v5769_v39  ;;  %p5206_p4 = pnand %p5205_p3, %p5199_p0 }
 0x4b7   :  { %4949 = vmatpush3.bf16.msra.mxu0 %v5794_v7  ;;  %4713 = vmatprep.mubr.msk.f32.mxu0 %vm5223_vm1, %v5222_v3 }
 0x4b8   :  { %4723 = vmatprep.subr.mxu0 %v5222_v3 }
 0x4ba   :  { %4714 = vmatmul.mubr.f32.gmra.mrb[14].mxu0 %v5778_v47 }
 0x4bb   :  { %4724 = vmatpush3.msra.mxu0 %v5796_v12  ;;  %4716 = vmatprep.mubr.msk.f32.mxu0 %vm5223_vm1, %v5222_v3 }
 0x4bc   :  { %4971 = vmatprep.subr.bf16.mxu0 %v5225_v48 }
 0x4be   :  { %4717 = vmatmul.mubr.f32.gmra.mrb[16].mxu0 %v5785_v58 }
 0x4bf   :  { %4725 = vmatprep.mubr.msk.f32.mxu0 %vm5223_vm1, %v5222_v3 }
 0x4c2   :  { %4726 = vmatmul.mubr.f32.vlgmr.msra.gmra.mrb[12].mxu0 %v5769_v39  ;;  %v5884_v39 = vsub.f32 %v2987_v30, %v5877_v32 }
 0x4c3   :  { %4728 = vmatprep.mubr.msk.f32.mxu0 %vm5223_vm1, %v5222_v3 }
 0x4c4   :  { %v3065_v49 = vand.u32 4294901760, %v5884_v39 }
 0x4c6   :  { %4729 = vmatmul.mubr.f32.gmra.mrb[14].mxu0 %v5778_v47  ;;  %v3066_v60 = vsub.f32 %v5884_v39, %v3065_v49 }
 0x4c7   :  { %4731 = vmatprep.mubr.msk.f32.mxu0 %vm5223_vm1, %v5222_v3 }
 0x4c8   :  { %v3067_v7 = vand.u32 4294901760, %v3066_v60 }
 0x4ca   :  { %4732 = vmatmul.mubr.f32.gmra.mrb[16].mxu0 %v5785_v58 }
 0x4cb   :  { %4839 = vmatprep.mubr.msk.f32.mxu0 %vm5223_vm1, %v5222_v3 }
 0x595   :  { %v2944_v35 = vpop.f32.mrb[12].mxu0 }
 0x596   :  { %v5001_v37 = vadd.f32 %v2944_v35, %v2381_v34  ;;  %v4727_v38 = vpop.f32.mrb[13].mxu0 }
 0x598   :  { %v2960_v41 = vmax.f32 %v5001_v37, 0.0 }
 0x599   :  { %v2950_v44 = vpop.f32.mrb[14].mxu0 }
 0x59a   :  { %v2996_v45 = vand.u32 4294901760, %v2960_v41  ;;  %v5002_v46 = vadd.f32 %v2950_v44, %v2386_v43  ;;  %v4730_v47 = vpop.f32.mrb[15].mxu0 }
 0x59c   :  { %v3095_v52 = vsub.f32 %v2960_v41, %v2996_v45  ;;  %v2961_v53 = vmax.f32 %v5002_v46, 0.0 }
 0x59d   :  { %v2956_v55 = vpop.f32.mrb[16].mxu0 }
 0x59e   :  { %v3096_v56 = vand.u32 4294901760, %v3095_v52  ;;  %v2999_v57 = vand.u32 4294901760, %v2961_v53  ;;  %v5003_v58 = vadd.f32 %v2956_v55, %v2391_v54  ;;  %v4733_v59 = vpop.f32.mrb[17].mxu0 }
 0x5a0   :  { %v5902_v63 = vpack.c.bf16 %v2999_v57, %v2996_v45  ;;  %v3102_v0 = vsub.f32 %v2961_v53, %v2999_v57  ;;  %v2962_v1 = vmax.f32 %v5003_v58, 0.0  ;;  %v3097_v2 = vsub.f32 %v3095_v52, %v3096_v56 }
 0x5a1   :  { %v3637_v45 = vsub.f32 %v3635_v29, %v3636_v36 }
 0x5a2   :  { %v3103_v4 = vand.u32 4294901760, %v3102_v0  ;;  %v5904_v5 = vand.u32 4294901760, %v2962_v1  ;;  %4952 = vmatpush3.bf16.msra.mxu1 %v5902_v63  ;;  %v4957_v6 = vpack.c.bf16 %v3102_v0, %v3095_v52  ;;  %v3098_v13 = vand.u32 4294901760, %v3097_v2  ;;  %v3561_v2 = vpop.permute.xlu0 %3560 }
 0x5a3   :  { %4738 = vmatprep.subr.mxu1 %v5222_v3  ;;  %v3638_v54 = vand.u32 4294901760, %v3637_v45 }
 0x5a4   :  { %v3104_v10 = vsub.f32 %v3102_v0, %v3103_v4  ;;  %v3109_v11 = vsub.f32 %v2962_v1, %v5904_v5  ;;  %v4963_v12 = vpack.c.bf16 %v3103_v4, %v3096_v56 }
 0x5a6   :  { %v3105_v14 = vand.u32 4294901760, %v3104_v10  ;;  %v3110_v15 = vand.u32 4294901760, %v3109_v11  ;;  %4739 = vmatpush3.msra.mxu1 %v5904_v5 }
 0x5a7   :  { %4741 = vmatmul.mubr.f32.vlgmr.msra.gmra.mrb[18].mxu1 %v3067_v7  ;;  %4953 = vmatprep.subr.bf16.mxu1 %v5225_v48 }
 0x5a8   :  { %v3111_v18 = vsub.f32 %v3109_v11, %v3110_v15  ;;  %4743 = vmatprep.mubr.msk.f32.mxu1 %vm5223_vm1, %v5222_v3  ;;  %v4954_v19 = vpack.c.bf16 %v3105_v14, %v3098_v13 }
 0x5aa   :  { %4955 = vmatpush3.bf16.msra.mxu1 %v4954_v19  ;;  %v3112_v21 = vand.u32 4294901760, %v3111_v18 }
 0x5ab   :  { %4744 = vmatmul.mubr.f32.gmra.mrb[20].mxu1 %v3077_v16  ;;  %4753 = vmatprep.subr.mxu1 %v5222_v3 }
 0x5ac   :  { %4746 = vmatprep.mubr.msk.f32.mxu1 %vm5223_vm1, %v5222_v3 }
 0x5ae   :  { %4754 = vmatpush3.msra.mxu1 %v3112_v21 }
 0x5af   :  { %4747 = vmatmul.mubr.f32.gmra.mrb[22].mxu1 %v3087_v20  ;;  %4956 = vmatprep.subr.bf16.mxu1 %v5225_v48 }
 0x5b0   :  { %4755 = vmatprep.mubr.msk.f32.mxu1 %vm5223_vm1, %v5222_v3 }
 0x5b3   :  { %4756 = vmatmul.mubr.f32.vlgmr.msra.gmra.mrb[18].mxu1 %v5877_v32 }
 0x5b4   :  { %4958 = vmatpush3.bf16.msra.mxu1 %v4957_v6  ;;  %4758 = vmatprep.mubr.msk.f32.mxu1 %vm5223_vm1, %v5222_v3 }
 0x5b5   :  { %4768 = vmatprep.subr.mxu1 %v5222_v3 }
 0x5b7   :  { %4759 = vmatmul.mubr.f32.gmra.mrb[20].mxu1 %v5886_v40 }
 0x5b8   :  { %4769 = vmatpush3.msra.mxu1 %v3109_v11  ;;  %4761 = vmatprep.mubr.msk.f32.mxu1 %vm5223_vm1, %v5222_v3 }
 0x5b9   :  { %4959 = vmatprep.subr.bf16.mxu1 %v5225_v48 }
 0x5bb   :  { %4762 = vmatmul.mubr.f32.gmra.mrb[22].mxu1 %v5893_v51 }
 0x5bc   :  { %4770 = vmatprep.mubr.msk.f32.mxu1 %vm5223_vm1, %v5222_v3 }
 0x5bf   :  { %4771 = vmatmul.mubr.f32.vlgmr.msra.gmra.mrb[18].mxu1 %v5884_v39  ;;  %v2984_v39 = vpop.permute.xlu1 %2983 }
 0x5c0   :  { %4961 = vmatpush3.bf16.msra.mxu1 %v5902_v63  ;;  %4773 = vmatprep.mubr.msk.f32.mxu1 %vm5223_vm1, %v5222_v3 }
 0x5c1   :  { %4783 = vmatprep.subr.mxu1 %v5222_v3 }
 0x5c3   :  { %4774 = vmatmul.mubr.f32.gmra.mrb[20].mxu1 %v5891_v50 }
 0x5c4   :  { %4784 = vmatpush3.msra.mxu1 %v5904_v5  ;;  %4776 = vmatprep.mubr.msk.f32.mxu1 %vm5223_vm1, %v5222_v3 }
 0x5c5   :  { %4962 = vmatprep.subr.bf16.mxu1 %v5225_v48 }
 0x5c7   :  { %4777 = vmatmul.mubr.f32.gmra.mrb[22].mxu1 %v5900_v62 }
 0x5c8   :  { %4785 = vmatprep.mubr.msk.f32.mxu1 %vm5223_vm1, %v5222_v3 }
 0x5cb   :  { %4786 = vmatmul.mubr.f32.vlgmr.msra.gmra.mrb[18].mxu1 %v3065_v49 }
 0x5cc   :  { %4964 = vmatpush3.bf16.msra.mxu1 %v4963_v12  ;;  %4788 = vmatprep.mubr.msk.f32.mxu1 %vm5223_vm1, %v5222_v3 }
 0x5cd   :  { %4798 = vmatprep.subr.mxu1 %v5222_v3 }
 0x5cf   :  { %4789 = vmatmul.mubr.f32.gmra.mrb[20].mxu1 %v3075_v61 }
 0x5d0   :  { %4799 = vmatpush3.msra.mxu1 %v3110_v15  ;;  %4791 = vmatprep.mubr.msk.f32.mxu1 %vm5223_vm1, %v5222_v3 }
 0x5d1   :  { %4965 = vmatprep.subr.bf16.mxu1 %v5225_v48 }
 0x5d3   :  { %4792 = vmatmul.mubr.f32.gmra.mrb[22].mxu1 %v3085_v9 }
 0x5d4   :  { %4800 = vmatprep.mubr.msk.f32.mxu1 %vm5223_vm1, %v5222_v3 }
 0x5d7   :  { %4801 = vmatmul.mubr.f32.vlgmr.msra.gmra.mrb[18].mxu1 %v5877_v32 }
 0x5d8   :  { %4967 = vmatpush3.bf16.msra.mxu1 %v5902_v63  ;;  %4803 = vmatprep.mubr.msk.f32.mxu1 %vm5223_vm1, %v5222_v3 }
 0x5d9   :  { %4813 = vmatprep.subr.mxu1 %v5222_v3 }
 0x5db   :  { %4804 = vmatmul.mubr.f32.gmra.mrb[20].mxu1 %v5886_v40 }
 0x5dc   :  { %4814 = vmatpush3.msra.mxu1 %v5904_v5  ;;  %4806 = vmatprep.mubr.msk.f32.mxu1 %vm5223_vm1, %v5222_v3 }
 0x5dd   :  { %4968 = vmatprep.subr.bf16.mxu1 %v5225_v48 }
 0x5df   :  { %4807 = vmatmul.mubr.f32.gmra.mrb[22].mxu1 %v5893_v51 }
 0x5e0   :  { %4815 = vmatprep.mubr.msk.f32.mxu1 %vm5223_vm1, %v5222_v3 }
 0x5e3   :  { %4816 = vmatmul.mubr.f32.vlgmr.msra.gmra.mrb[18].mxu1 %v5877_v32 }
 0x5e4   :  { %4818 = vmatprep.mubr.msk.f32.mxu1 %vm5223_vm1, %v5222_v3 }
 0x5e7   :  { %4819 = vmatmul.mubr.f32.gmra.mrb[20].mxu1 %v5886_v40 }
 0x5e8   :  { %4821 = vmatprep.mubr.msk.f32.mxu1 %vm5223_vm1, %v5222_v3 }
 0x5eb   :  { %4822 = vmatmul.mubr.f32.gmra.mrb[22].mxu1 %v5893_v51 }
 0x5ec   :  { %4830 = vmatprep.mubr.msk.f32.mxu1 %vm5223_vm1, %v5222_v3 }
 0x6b6   :  { %v3537_v26 = vpop.f32.mrb[18].mxu1 }
 0x6b7   :  { %v5004_v27 = vadd.f32 %v3537_v26, %v2974_v25  ;;  %v4817_v28 = vpop.f32.mrb[19].mxu1 }
 0x6b9   :  { %v3553_v30 = vmax.f32 %v5004_v27, 0.0 }
 0x6ba   :  { %v3543_v32 = vpop.f32.mrb[20].mxu1 }
 0x6bb   :  { %v3567_v33 = vand.u32 4294901760, %v3553_v30  ;;  %v5005_v34 = vadd.f32 %v3543_v32, %v2979_v31  ;;  %v4820_v35 = vpop.f32.mrb[21].mxu1 }
 0x6bd   :  { %v3646_v37 = vsub.f32 %v3553_v30, %v3567_v33  ;;  %v3554_v38 = vmax.f32 %v5005_v34, 0.0 }
 0x6be   :  { %v3549_v40 = vpop.f32.mrb[22].mxu1 }
 0x6bf   :  { %v3647_v41 = vand.u32 4294901760, %v3646_v37  ;;  %v3570_v42 = vand.u32 4294901760, %v3554_v38  ;;  %v5006_v43 = vadd.f32 %v3549_v40, %v2984_v39  ;;  %v4823_v44 = vpop.f32.mrb[23].mxu1 }
 0x6c1   :  { %v4969_v46 = vpack.c.bf16 %v3570_v42, %v3567_v33  ;;  %v3653_v47 = vsub.f32 %v3554_v38, %v3570_v42  ;;  %v3555_v49 = vmax.f32 %v5006_v43, 0.0  ;;  %v3648_v50 = vsub.f32 %v3646_v37, %v3647_v41 }
 0x6c3   :  { %v3654_v51 = vand.u32 4294901760, %v3653_v47  ;;  %v3573_v52 = vand.u32 4294901760, %v3555_v49  ;;  %4970 = vmatpush3.bf16.msra.mxu1 %v4969_v46  ;;  %v4975_v53 = vpack.c.bf16 %v3653_v47, %v3646_v37  ;;  %v3649_v58 = vand.u32 4294901760, %v3648_v50 }
 0x6c4   :  { %4828 = vmatprep.subr.mxu1 %v5222_v3 }
 0x6c5   :  { %v3655_v55 = vsub.f32 %v3653_v47, %v3654_v51  ;;  %v3660_v56 = vsub.f32 %v3555_v49, %v3573_v52  ;;  %v4981_v57 = vpack.c.bf16 %v3654_v51, %v3647_v41 }
 0x6c7   :  { %v3656_v59 = vand.u32 4294901760, %v3655_v55  ;;  %v3661_v60 = vand.u32 4294901760, %v3660_v56  ;;  %4829 = vmatpush3.msra.mxu1 %v3573_v52 }
 0x6c8   :  { %4831 = vmatmul.mubr.f32.vlgmr.msra.gmra.mrb[24].mxu1 %v3638_v54 }
 0x6c9   :  { %v3662_v61 = vsub.f32 %v3660_v56, %v3661_v60  ;;  %v4972_v62 = vpack.c.bf16 %v3656_v59, %v3649_v58 }
 0x6cb   :  { %4973 = vmatpush3.bf16.msra.mxu0 %v4972_v62  ;;  %v3663_v63 = vand.u32 4294901760, %v3662_v61 }
 0x6cc   :  { %4837 = vmatprep.subr.mxu0 %v5222_v3 }
 0x6cf   :  { %4838 = vmatpush3.msra.mxu0 %v3663_v63 }
 0x6d0   :  { %4840 = vmatmul.mubr.f32.vlgmr.msra.gmra.mrb[18].mxu0 %v5982_v24  ;;  %4974 = vmatprep.subr.bf16.mxu0 %v5225_v48 }
 0x6d1   :  { %4976 = vmatpush3.bf16.msra.mxu0 %v4975_v53  ;;  %4848 = vmatprep.mubr.msk.f32.mxu0 %vm5223_vm1, %v5222_v3 }
 0x6d2   :  { %4846 = vmatprep.subr.mxu0 %v5222_v3 }
 0x6d5   :  { %4847 = vmatpush3.msra.mxu0 %v3660_v56 }
 0x6d6   :  { %4977 = vmatprep.subr.bf16.mxu0 %v5225_v48 }
 0x6d8   :  { %4849 = vmatmul.mubr.f32.vlgmr.msra.gmra.mrb[18].mxu0 %v3635_v29 }
 0x6d9   :  { %4979 = vmatpush3.bf16.msra.mxu0 %v4969_v46  ;;  %4857 = vmatprep.mubr.msk.f32.mxu0 %vm5223_vm1, %v5222_v3 }
 0x6da   :  { %4855 = vmatprep.subr.mxu0 %v5222_v3 }
 0x6dd   :  { %4856 = vmatpush3.msra.mxu0 %v3573_v52 }
 0x6de   :  { %4980 = vmatprep.subr.bf16.mxu0 %v5225_v48 }
 0x6e0   :  { %4858 = vmatmul.mubr.f32.vlgmr.msra.gmra.mrb[18].mxu0 %v3636_v36 }
 0x6e1   :  { %4982 = vmatpush3.bf16.msra.mxu0 %v4981_v57  ;;  %4866 = vmatprep.mubr.msk.f32.mxu0 %vm5223_vm1, %v5222_v3 }
 0x6e2   :  { %4864 = vmatprep.subr.mxu0 %v5222_v3 }
 0x6e5   :  { %4865 = vmatpush3.msra.mxu0 %v3661_v60 }
 0x6e6   :  { %4983 = vmatprep.subr.bf16.mxu0 %v5225_v48 }
 0x6e8   :  { %4867 = vmatmul.mubr.f32.vlgmr.msra.gmra.mrb[18].mxu0 %v5982_v24 }
 0x6e9   :  { %4985 = vmatpush3.bf16.msra.mxu0 %v4969_v46  ;;  %4875 = vmatprep.mubr.msk.f32.mxu0 %vm5223_vm1, %v5222_v3 }
 0x6ea   :  { %4873 = vmatprep.subr.mxu0 %v5222_v3 }
 0x6ed   :  { %4874 = vmatpush3.msra.mxu0 %v3573_v52 }
 0x6f0   :  { %4876 = vmatmul.mubr.f32.vlgmr.msra.gmra.mrb[18].mxu0 %v5982_v24 }
 0x79b   :  { %v3640_v0 = vpop.f32.mrb[24].mxu1 }
 0x79c   :  { %v4832_v1 = vpop.f32.mrb[25].mxu1  ;;  %v3641_v4 = vadd.f32 %v3640_v0, %v3561_v2 }
 0x7c3   :  { %v4034_v5 = vpop.f32.mrb[18].mxu0 }
 0x7c4   :  { %v5008_v6 = vadd.f32 %v4034_v5, %v3641_v4  ;;  %v4877_v48 = vpop.f32.mrb[19].mxu0 }
 0x7c6   :  { %4038 = vst [vmem:[#allocation2] sm:$0xff] %v5008_v6 }
 0x7c7   :  { %5209 = shalt.err (!%p5206_p4)
}
 0x7c8   :  { %s5210_s20 = scalar_lea.hbm %s6024_s6, 128 }
 0x7c9   :  { %p5211_p5 = scmp.ne.s32.totalorder %s6024_s6, %s5210_s20  ;;  %p5214_p6 = scmp.lt.u32.totalorder %s5210_s20, %s6024_s6 }
 0x7cb   :  { %p5216_p7 = pnand %p5214_p6, %p5211_p5 }
 0x7cd   :  { %5219 = shalt.err (!%p5216_p7)
}
 0x7ce   :  { %4048 = dma.vmem_to_hbm [thread:$0]  %s4046_s16, 128, %s6024_s6, [#allocation3]  }
 0x7cf   :  { %5220 = dma.done.wait [#allocation3], 128  }
 0x7d0   :  { %5221 = vsyncadd [#allocation3], 4294967168 }
 0x7d1   :  { %4052 = vsyncpa [#allocation3], 1 }

</bundles_post_ra>
